<compile_context>
chip_gen: v7x
topology: tpu7x:2x2x1
jax: 0.10.0
libtpu: 0.0.40
codegen_flags: <defaults>
</compile_context>

<pallas_src>
import functools
import math

import jax
import jax.numpy as jnp
from jax.experimental import pallas as pl
from jax.experimental.pallas import tpu as pltpu

# ----------------------- small synthetic ESM2 config -----------------------
VOCAB = 33            # ESM2 alphabet size
PAD_VOCAB = 128       # lane-dense decoder output (sliced back to VOCAB in JAX)
HIDDEN = 32
N_HEADS = 4
HEAD_DIM = HIDDEN // N_HEADS
INTERMEDIATE = 64
N_LAYERS = 2
LN_EPS = 1e-5
PAD_ID = 1
MASK_ID = 32
MASK_RATIO_TRAIN = 0.15 * 0.8   # ESM token-dropout scaling constant

_SQRT2 = math.sqrt(2.0)


def _gelu_exact(x):
    # exact ESM gelu: x * 0.5 * (1 + erf(x / sqrt(2)))  (erf runs on the EUP path)
    return x * 0.5 * (1.0 + jax.lax.erf(x / _SQRT2))


def _layernorm(x, g, b, eps):
    mu = jnp.mean(x, axis=-1, keepdims=True)
    var = jnp.mean(jnp.square(x - mu), axis=-1, keepdims=True)
    return (x - mu) * jax.lax.rsqrt(var + eps) * g + b


# ------------------------------- fused kernel --------------------------------
def _esm2_fused_kernel(
        # grid-invariant inputs
        x_ref, bias_ref, cos_ref, sin_ref,
        # per-layer stacked weights (layer axis squeezed by BlockSpec)
        ln1_g_ref, ln1_b_ref, qkv_w_ref, qkv_b_ref, o_w_ref, o_b_ref,
        ln2_g_ref, ln2_b_ref, i_w_ref, i_b_ref, out_w_ref, out_b_ref,
        # LM-head weights (only used at the last layer step)
        fln_g_ref, fln_b_ref, dw_ref, db_ref, lg_ref, lb_ref, decw_ref, decb_ref,
        # outputs
        hid_ref, normed_ref, logits_ref,
        # scratch (persists across grid steps)
        resid_ref, ctx_ref,
        *, n_heads, head_dim, n_batch, seq, eps):
    """One grid step = one transformer layer over the full (B*S, H) token slab.

    resid_ref holds the residual stream in VMEM for the whole forward pass."""
    layer = pl.program_id(0)

    @pl.when(layer == 0)
    def _():
        resid_ref[...] = x_ref[...]

    h = resid_ref[...]                                         # (B*S, H) f32
    hid = n_heads * head_dim

    # ----- attention sublayer: LN -> fused QKV(+rot folded) -> rope -> attn -> proj -----
    x_ln = _layernorm(h, ln1_g_ref[...], ln1_b_ref[...], eps)
    qkv = jnp.dot(x_ln.astype(jnp.bfloat16), qkv_w_ref[...],
                  preferred_element_type=jnp.float32) + qkv_b_ref[...]   # (B*S, 5H)

    cos = cos_ref[...]
    sin = sin_ref[...]
    # rotate_half already folded into the 2nd/4th weight blocks -> rope is pure VPU math
    q = qkv[:, 0 * hid:1 * hid] * cos + qkv[:, 1 * hid:2 * hid] * sin
    k = qkv[:, 2 * hid:3 * hid] * cos + qkv[:, 3 * hid:4 * hid] * sin
    v = qkv[:, 4 * hid:5 * hid]

    qb = q.astype(jnp.bfloat16)
    kb = k.astype(jnp.bfloat16)
    vb = v.astype(jnp.bfloat16)
    bias_all = bias_ref[...]                                   # (B, S) additive key mask

    # Static batch/head loops; per-head ctx scattered into VMEM scratch so the output
    # projection is one wide matmul over the full slab.
    for b in range(n_batch):
        r0 = b * seq
        bias_b = bias_all[b:b + 1, :]                          # (1, S)
        for hh in range(n_heads):
            lo = hh * head_dim
            qh = qb[r0:r0 + seq, lo:lo + head_dim]
            kh = kb[r0:r0 + seq, lo:lo + head_dim]
            vh = vb[r0:r0 + seq, lo:lo + head_dim]
            s = jax.lax.dot_general(qh, kh, (((1,), (1,)), ((), ())),
                                    preferred_element_type=jnp.float32)   # (S, S)
            s = s + bias_b
            s = s - jnp.max(s, axis=-1, keepdims=True)
            p = jnp.exp(s)
            p = p * pl.reciprocal(jnp.sum(p, axis=-1, keepdims=True), approx=True)
            ctx_ref[r0:r0 + seq, lo:lo + head_dim] = jnp.dot(
                p.astype(jnp.bfloat16), vh, preferred_element_type=jnp.float32)

    attn = jnp.dot(ctx_ref[...].astype(jnp.bfloat16), o_w_ref[...],
                   preferred_element_type=jnp.float32) + o_b_ref[...]
    h = h + attn

    # ----- MLP sublayer: LN -> dense+GELU -> dense -> residual -----
    x_ln2 = _layernorm(h, ln2_g_ref[...], ln2_b_ref[...], eps)
    inter = jnp.dot(x_ln2.astype(jnp.bfloat16), i_w_ref[...],
                    preferred_element_type=jnp.float32) + i_b_ref[...]
    inter = _gelu_exact(inter)
    h = h + jnp.dot(inter.astype(jnp.bfloat16), out_w_ref[...],
                    preferred_element_type=jnp.float32) + out_b_ref[...]

    resid_ref[...] = h          # residual stream stays in VMEM across layers
    hid_ref[...] = h            # per-layer hidden state (output_hidden_states=True)

    # ----- LM head at the last layer: emb_layer_norm_after -> dense+GELU -> LN -> decoder -----
    @pl.when(layer == pl.num_programs(0) - 1)
    def _():
        normed = _layernorm(h, fln_g_ref[...], fln_b_ref[...], eps)
        normed_ref[...] = normed
        z = jnp.dot(normed.astype(jnp.bfloat16), dw_ref[...],
                    preferred_element_type=jnp.float32) + db_ref[...]
        z = _gelu_exact(z)
        z = _layernorm(z, lg_ref[...], lb_ref[...], eps)
        logits_ref[...] = jnp.dot(z.astype(jnp.bfloat16), decw_ref[...],
                                  preferred_element_type=jnp.float32) + decb_ref[...]


# ------------------------------ kernel wrapper --------------------------------
def esm2_fused(h0, key_bias, cos, sin, params, B, S):
    L, M, H, I = N_LAYERS, B * S, HIDDEN, INTERMEDIATE
    st = params["stack"]
    lm = params["lm_head"]
    const2 = lambda l: (0, 0)
    per_layer = lambda l: (l, 0, 0)

    operands = (
        h0, key_bias, cos, sin,
        st["ln1_g"], st["ln1_b"], st["qkv_w"], st["qkv_b"], st["o_w"], st["o_b"],
        st["ln2_g"], st["ln2_b"], st["i_w"], st["i_b"], st["out_w"], st["out_b"],
        params["final_ln_g"], params["final_ln_b"],
        lm["dense_w"], lm["dense_b"], lm["ln_g"], lm["ln_b"],
        lm["decoder_w_pad"], lm["decoder_b_pad"],
    )

    # advisory cost estimate so XLA schedules the embedding/mask glue around the call
    flops = (L * (2 * M * H * 5 * H                      # fused QKV
                  + 4 * B * N_HEADS * S * S * HEAD_DIM   # scores + ctx
                  + 2 * M * H * H                        # out proj
                  + 2 * M * H * I + 2 * M * I * H)       # MLP
             + 2 * M * H * H + 2 * M * H * PAD_VOCAB)    # LM head
    transcendentals = L * (B * N_HEADS * S * S + M * I) + M * H
    out_bytes = (L * M * H + M * H + M * PAD_VOCAB) * 4
    bytes_accessed = sum(int(a.size) * a.dtype.itemsize for a in operands) + out_bytes
    cost = pl.CostEstimate(flops=int(flops), transcendentals=int(transcendentals),
                           bytes_accessed=int(bytes_accessed))

    grid_spec = pltpu.PrefetchScalarGridSpec(
        num_scalar_prefetch=0,
        grid=(L,),
        in_specs=[
            pl.BlockSpec((M, H), const2),                 # embedding-scaled hidden input
            pl.BlockSpec((B, S), const2),                 # additive key mask
            pl.BlockSpec((M, H), const2),                 # rotary cos (tiled over heads & batch)
            pl.BlockSpec((M, H), const2),                 # rotary sin
            pl.BlockSpec((None, 1, H), per_layer),        # attn LN gamma
            pl.BlockSpec((None, 1, H), per_layer),        # attn LN beta
            pl.BlockSpec((None, H, 5 * H), per_layer),    # fused qkv(+rot) weight (bf16)
            pl.BlockSpec((None, 1, 5 * H), per_layer),    # fused qkv(+rot) bias
            pl.BlockSpec((None, H, H), per_layer),        # out-proj weight (bf16)
            pl.BlockSpec((None, 1, H), per_layer),        # out-proj bias
            pl.BlockSpec((None, 1, H), per_layer),        # ffn LN gamma
            pl.BlockSpec((None, 1, H), per_layer),        # ffn LN beta
            pl.BlockSpec((None, H, I), per_layer),        # intermediate weight (bf16)
            pl.BlockSpec((None, 1, I), per_layer),        # intermediate bias
            pl.BlockSpec((None, I, H), per_layer),        # output weight (bf16)
            pl.BlockSpec((None, 1, H), per_layer),        # output bias
            pl.BlockSpec((1, H), const2),                 # final LN gamma
            pl.BlockSpec((1, H), const2),                 # final LN beta
            pl.BlockSpec((H, H), const2),                 # lm dense weight (bf16)
            pl.BlockSpec((1, H), const2),                 # lm dense bias
            pl.BlockSpec((1, H), const2),                 # lm LN gamma
            pl.BlockSpec((1, H), const2),                 # lm LN beta
            pl.BlockSpec((H, PAD_VOCAB), const2),         # decoder weight (lane-padded, bf16)
            pl.BlockSpec((1, PAD_VOCAB), const2),         # decoder bias (lane-padded)
        ],
        out_specs=(
            pl.BlockSpec((None, M, H), per_layer),        # per-layer hidden states
            pl.BlockSpec((M, H), const2),                 # final normed hidden
            pl.BlockSpec((M, PAD_VOCAB), const2),         # lane-dense logits
        ),
        scratch_shapes=[
            pltpu.VMEM((M, H), jnp.float32),              # residual stream (lives in VMEM)
            pltpu.VMEM((M, H), jnp.float32),              # per-head ctx staging
        ],
    )

    return pl.pallas_call(
        functools.partial(_esm2_fused_kernel, n_heads=N_HEADS, head_dim=HEAD_DIM,
                          n_batch=B, seq=S, eps=LN_EPS),
        grid_spec=grid_spec,
        out_shape=(jax.ShapeDtypeStruct((L, M, H), jnp.float32),
                   jax.ShapeDtypeStruct((M, H), jnp.float32),
                   jax.ShapeDtypeStruct((M, PAD_VOCAB), jnp.float32)),
        compiler_params=pltpu.CompilerParams(dimension_semantics=("arbitrary",)),
        cost_estimate=cost,
    )(*operands)


# ------------------------------ model glue ----------------------------------
def rotary_tables(seq_len, n_heads=N_HEADS, dim=HEAD_DIM):
    """ESM rotary cos/sin tables, tiled across heads -> (S, n_heads*dim)."""
    inv_freq = 1.0 / (10000.0 ** (jnp.arange(0, dim, 2, dtype=jnp.float32) / dim))
    t = jnp.arange(seq_len, dtype=jnp.float32)
    freqs = jnp.outer(t, inv_freq)                       # (S, D/2)
    emb = jnp.concatenate([freqs, freqs], axis=-1)       # (S, D)  (ESM: concat, not interleave)
    cos = jnp.tile(jnp.cos(emb), (1, n_heads))           # (S, H)
    sin = jnp.tile(jnp.sin(emb), (1, n_heads))           # (S, H)
    return cos, sin


def init_params(key):
    def dense(k, shape):
        return 0.02 * jax.random.normal(k, shape, dtype=jnp.float32)

    # rotate_half as a per-head block-diagonal matrix, folded into QKV weights on the host
    d2 = HEAD_DIM // 2
    rh = jnp.block([[jnp.zeros((d2, d2), jnp.float32), jnp.eye(d2, dtype=jnp.float32)],
                    [-jnp.eye(d2, dtype=jnp.float32), jnp.zeros((d2, d2), jnp.float32)]])
    rot = jnp.kron(jnp.eye(N_HEADS, dtype=jnp.float32), rh)     # (H, H)
    scale = HEAD_DIM ** -0.5

    keys = jax.random.split(key, 3 + N_LAYERS)
    params = {"word_emb": dense(keys[0], (VOCAB, HIDDEN))}

    qkv_w, qkv_b, o_w, o_b = [], [], [], []
    i_w, i_b, out_w, out_b = [], [], [], []
    for li in range(N_LAYERS):
        lk = jax.random.split(keys[3 + li], 6)
        wq = dense(lk[0], (HIDDEN, HIDDEN))
        wk = dense(lk[1], (HIDDEN, HIDDEN))
        wv = dense(lk[2], (HIDDEN, HIDDEN))
        bq = jnp.zeros((HIDDEN,), jnp.float32)
        bk = jnp.zeros((HIDDEN,), jnp.float32)
        bv = jnp.zeros((HIDDEN,), jnp.float32)
        # packed QKV with rotate_half and the 1/sqrt(head_dim) q-scale folded in:
        #   [Wq*s | (Wq@rot)*s | Wk | Wk@rot | Wv]
        qkv_w.append(jnp.concatenate(
            [wq * scale, (wq @ rot) * scale, wk, wk @ rot, wv], axis=1))
        qkv_b.append(jnp.concatenate(
            [bq * scale, (bq @ rot) * scale, bk, bk @ rot, bv])[None, :])
        o_w.append(dense(lk[3], (HIDDEN, HIDDEN)))
        o_b.append(jnp.zeros((1, HIDDEN), jnp.float32))
        i_w.append(dense(lk[4], (HIDDEN, INTERMEDIATE)))
        i_b.append(jnp.zeros((1, INTERMEDIATE), jnp.float32))
        out_w.append(dense(lk[5], (INTERMEDIATE, HIDDEN)))
        out_b.append(jnp.zeros((1, HIDDEN), jnp.float32))

    L = N_LAYERS
    params["stack"] = dict(
        ln1_g=jnp.ones((L, 1, HIDDEN), jnp.float32),
        ln1_b=jnp.zeros((L, 1, HIDDEN), jnp.float32),
        qkv_w=jnp.stack(qkv_w).astype(jnp.bfloat16),
        qkv_b=jnp.stack(qkv_b),
        o_w=jnp.stack(o_w).astype(jnp.bfloat16),
        o_b=jnp.stack(o_b),
        ln2_g=jnp.ones((L, 1, HIDDEN), jnp.float32),
        ln2_b=jnp.zeros((L, 1, HIDDEN), jnp.float32),
        i_w=jnp.stack(i_w).astype(jnp.bfloat16),
        i_b=jnp.stack(i_b),
        out_w=jnp.stack(out_w).astype(jnp.bfloat16),
        out_b=jnp.stack(out_b),
    )
    params["final_ln_g"] = jnp.ones((1, HIDDEN), jnp.float32)
    params["final_ln_b"] = jnp.zeros((1, HIDDEN), jnp.float32)

    hk = jax.random.split(keys[1], 2)
    dec_w = dense(hk[1], (HIDDEN, VOCAB))
    params["lm_head"] = dict(
        dense_w=dense(hk[0], (HIDDEN, HIDDEN)).astype(jnp.bfloat16),
        dense_b=jnp.zeros((1, HIDDEN), jnp.float32),
        ln_g=jnp.ones((1, HIDDEN), jnp.float32),
        ln_b=jnp.zeros((1, HIDDEN), jnp.float32),
        # lane-dense (padded to 128) decoder; logits sliced back to VOCAB in JAX
        decoder_w_pad=jnp.zeros((HIDDEN, PAD_VOCAB), jnp.float32)
                        .at[:, :VOCAB].set(dec_w).astype(jnp.bfloat16),
        decoder_b_pad=jnp.zeros((1, PAD_VOCAB), jnp.float32),
    )
    return params


def esm2_forward(params, input_ids, attention_mask, output_hidden_states=True):
    """Returns (logits [B,S,VOCAB], hidden_states list or None), matching
    EsmForMaskedLM(output_hidden_states=True) semantics."""
    B, S = input_ids.shape
    am = attention_mask.astype(jnp.float32)

    # --- EsmEmbeddings (token dropout scaling, rotary positions -> no abs pos emb) ---
    x = params["word_emb"][input_ids]                              # (B, S, H)
    mask_tok = (input_ids == MASK_ID).astype(jnp.float32)
    x = x * (1.0 - mask_tok[..., None])
    src_len = jnp.maximum(jnp.sum(am, axis=-1), 1.0)               # guard all-padding rows
    # HF counts mask tokens without multiplying by the attention mask
    mask_ratio_obs = jnp.sum(mask_tok, axis=-1) / src_len
    x = x * ((1.0 - MASK_RATIO_TRAIN) / (1.0 - mask_ratio_obs))[:, None, None]
    x = x * am[..., None]

    key_bias = (1.0 - am) * (-1e9)                                 # (B, S) additive key mask
    cos, sin = rotary_tables(S)
    cos = jnp.tile(cos, (B, 1))                                    # (B*S, H)
    sin = jnp.tile(sin, (B, 1))

    h0 = x.reshape(B * S, HIDDEN)
    hid_layers, normed, logits_pad = esm2_fused(h0, key_bias, cos, sin, params, B, S)

    logits = logits_pad[:, :VOCAB].reshape(B, S, VOCAB)
    if not output_hidden_states:
        return logits, None
    all_hidden = [x]
    for l in range(N_LAYERS - 1):
        all_hidden.append(hid_layers[l].reshape(B, S, HIDDEN))
    all_hidden.append(normed.reshape(B, S, HIDDEN))   # last state is post final-LN, as in HF
    return logits, all_hidden


# --------------------------------- main --------------------------------------
if __name__ == "__main__":
    key = jax.random.PRNGKey(0)
    pkey, ikey = jax.random.split(key)
    params = init_params(pkey)

    B, S = 2, 8
    # deterministic "protein" token ids (standard aa tokens live in [4, 24))
    input_ids = jax.random.randint(ikey, (B, S), 4, 24, dtype=jnp.int32)
    input_ids = input_ids.at[:, 0].set(0)          # CLS
    input_ids = input_ids.at[0, S - 1].set(2)      # EOS
    input_ids = input_ids.at[1, 5].set(2)          # EOS for shorter seq
    input_ids = input_ids.at[1, 6:].set(PAD_ID)    # padding
    attention_mask = jnp.ones((B, S), jnp.int32).at[1, 6:].set(0)

    forward = jax.jit(functools.partial(esm2_forward, output_hidden_states=True))
    logits, hiddens = forward(params, input_ids, attention_mask)
    jax.block_until_ready(logits)
    assert logits.shape == (B, S, VOCAB)
    assert len(hiddens) == N_LAYERS + 1
    assert bool(jnp.all(jnp.isfinite(logits)))
    print("KERNEL_OK")
</pallas_src>

<mosaic_0001>
module attributes {stable_mosaic.version = 11 : i64} {
  func.func @_esm2_fused_kernel(%arg0: i32, %arg1: memref<16x32xf32, #tpu.memory_space<vmem>>, %arg2: memref<2x8xf32, #tpu.memory_space<vmem>>, %arg3: memref<16x32xf32, #tpu.memory_space<vmem>>, %arg4: memref<16x32xf32, #tpu.memory_space<vmem>>, %arg5: memref<1x1x32xf32, #tpu.memory_space<vmem>>, %arg6: memref<1x1x32xf32, #tpu.memory_space<vmem>>, %arg7: memref<1x32x160xbf16, #tpu.memory_space<vmem>>, %arg8: memref<1x1x160xf32, #tpu.memory_space<vmem>>, %arg9: memref<1x32x32xbf16, #tpu.memory_space<vmem>>, %arg10: memref<1x1x32xf32, #tpu.memory_space<vmem>>, %arg11: memref<1x1x32xf32, #tpu.memory_space<vmem>>, %arg12: memref<1x1x32xf32, #tpu.memory_space<vmem>>, %arg13: memref<1x32x64xbf16, #tpu.memory_space<vmem>>, %arg14: memref<1x1x64xf32, #tpu.memory_space<vmem>>, %arg15: memref<1x64x32xbf16, #tpu.memory_space<vmem>>, %arg16: memref<1x1x32xf32, #tpu.memory_space<vmem>>, %arg17: memref<1x32xf32, #tpu.memory_space<vmem>>, %arg18: memref<1x32xf32, #tpu.memory_space<vmem>>, %arg19: memref<32x32xbf16, #tpu.memory_space<vmem>>, %arg20: memref<1x32xf32, #tpu.memory_space<vmem>>, %arg21: memref<1x32xf32, #tpu.memory_space<vmem>>, %arg22: memref<1x32xf32, #tpu.memory_space<vmem>>, %arg23: memref<32x128xbf16, #tpu.memory_space<vmem>>, %arg24: memref<1x128xf32, #tpu.memory_space<vmem>>, %arg25: memref<1x16x32xf32, #tpu.memory_space<vmem>>, %arg26: memref<16x32xf32, #tpu.memory_space<vmem>>, %arg27: memref<16x128xf32, #tpu.memory_space<vmem>>, %arg28: memref<16x32xf32, #tpu.memory_space<vmem>>, %arg29: memref<16x32xf32, #tpu.memory_space<vmem>>) attributes {dimension_semantics = [#tpu.dimension_semantics<arbitrary>], iteration_bounds = array<i64: 2>, scalar_prefetch = 0 : i64, scratch_operands = 2 : i64, tpu.core_type = #tpu.core_type<tc>, window_params = [{pipeline_mode = #tpu.pipeline_mode<synchronous>, transform_indices = @transform_0, window_bounds = array<i64: 16, 32>}, {pipeline_mode = #tpu.pipeline_mode<synchronous>, transform_indices = @transform_1, window_bounds = array<i64: 2, 8>}, {pipeline_mode = #tpu.pipeline_mode<synchronous>, transform_indices = @transform_2, window_bounds = array<i64: 16, 32>}, {pipeline_mode = #tpu.pipeline_mode<synchronous>, transform_indices = @transform_3, window_bounds = array<i64: 16, 32>}, {transform_indices = @transform_4, window_bounds = array<i64: 1, 1, 32>}, {transform_indices = @transform_5, window_bounds = array<i64: 1, 1, 32>}, {transform_indices = @transform_6, window_bounds = array<i64: 1, 32, 160>}, {transform_indices = @transform_7, window_bounds = array<i64: 1, 1, 160>}, {transform_indices = @transform_8, window_bounds = array<i64: 1, 32, 32>}, {transform_indices = @transform_9, window_bounds = array<i64: 1, 1, 32>}, {transform_indices = @transform_10, window_bounds = array<i64: 1, 1, 32>}, {transform_indices = @transform_11, window_bounds = array<i64: 1, 1, 32>}, {transform_indices = @transform_12, window_bounds = array<i64: 1, 32, 64>}, {transform_indices = @transform_13, window_bounds = array<i64: 1, 1, 64>}, {transform_indices = @transform_14, window_bounds = array<i64: 1, 64, 32>}, {transform_indices = @transform_15, window_bounds = array<i64: 1, 1, 32>}, {pipeline_mode = #tpu.pipeline_mode<synchronous>, transform_indices = @transform_16, window_bounds = array<i64: 1, 32>}, {pipeline_mode = #tpu.pipeline_mode<synchronous>, transform_indices = @transform_17, window_bounds = array<i64: 1, 32>}, {pipeline_mode = #tpu.pipeline_mode<synchronous>, transform_indices = @transform_18, window_bounds = array<i64: 32, 32>}, {pipeline_mode = #tpu.pipeline_mode<synchronous>, transform_indices = @transform_19, window_bounds = array<i64: 1, 32>}, {pipeline_mode = #tpu.pipeline_mode<synchronous>, transform_indices = @transform_20, window_bounds = array<i64: 1, 32>}, {pipeline_mode = #tpu.pipeline_mode<synchronous>, transform_indices = @transform_21, window_bounds = array<i64: 1, 32>}, {pipeline_mode = #tpu.pipeline_mode<synchronous>, transform_indices = @transform_22, window_bounds = array<i64: 32, 128>}, {pipeline_mode = #tpu.pipeline_mode<synchronous>, transform_indices = @transform_23, window_bounds = array<i64: 1, 128>}, {transform_indices = @transform_24, window_bounds = array<i64: 1, 16, 32>}, {pipeline_mode = #tpu.pipeline_mode<synchronous>, transform_indices = @transform_25, window_bounds = array<i64: 16, 32>}, {pipeline_mode = #tpu.pipeline_mode<synchronous>, transform_indices = @transform_26, window_bounds = array<i64: 16, 128>}]} {
    %c0_i32 = arith.constant 0 : i32
    %0 = arith.cmpi eq, %arg0, %c0_i32 : i32
    %1 = arith.extui %0 : i1 to i32
    %c0_i32_0 = arith.constant 0 : i32
    %2 = arith.cmpi ne, %1, %c0_i32_0 : i32
    scf.if %2 {
      %c0_113 = arith.constant 0 : index
      %c0_114 = arith.constant 0 : index
      %277 = vector.load %arg1[%c0_113, %c0_114] : memref<16x32xf32, #tpu.memory_space<vmem>>, vector<16x32xf32>
      %c0_115 = arith.constant 0 : index
      %c0_116 = arith.constant 0 : index
      %278 = vector.load %arg28[%c0_115, %c0_116] : memref<16x32xf32, #tpu.memory_space<vmem>>, vector<16x32xf32>
      tpu.vector_store %arg28[%c0_115, %c0_116], %277 {strides = array<i32>} : memref<16x32xf32, #tpu.memory_space<vmem>>, vector<16x32xf32>,
    } else {
    }
    %c0 = arith.constant 0 : index
    %c0_1 = arith.constant 0 : index
    %3 = vector.load %arg28[%c0, %c0_1] : memref<16x32xf32, #tpu.memory_space<vmem>>, vector<16x32xf32>
    %c0_2 = arith.constant 0 : index
    %c0_3 = arith.constant 0 : index
    %c0_4 = arith.constant 0 : index
    %4 = vector.load %arg5[%c0_2, %c0_3, %c0_4] : memref<1x1x32xf32, #tpu.memory_space<vmem>>, vector<1x1x32xf32>
    %5 = vector.shape_cast %4 : vector<1x1x32xf32> to vector<1x32xf32>
    %c0_5 = arith.constant 0 : index
    %c0_6 = arith.constant 0 : index
    %c0_7 = arith.constant 0 : index
    %6 = vector.load %arg6[%c0_5, %c0_6, %c0_7] : memref<1x1x32xf32, #tpu.memory_space<vmem>>, vector<1x1x32xf32>
    %7 = vector.shape_cast %6 : vector<1x1x32xf32> to vector<1x32xf32>
    %cst = arith.constant dense<0.000000e+00> : vector<16xf32>
    %8 = vector.multi_reduction <add>, %3, %cst [1] : vector<16x32xf32> to vector<16xf32>
    %9 = vector.shape_cast %8 : vector<16xf32> to vector<16x1xf32>
    %cst_8 = arith.constant 3.200000e+01 : f32
    %10 = vector.broadcast %cst_8 : f32 to vector<16x1xf32>
    %11 = arith.divf %9, %10 : vector<16x1xf32>
    %12 = vector.broadcast %11 : vector<16x1xf32> to vector<16x32xf32>
    %13 = arith.subf %3, %12 : vector<16x32xf32>
    %14 = arith.mulf %13, %13 : vector<16x32xf32>
    %cst_9 = arith.constant dense<0.000000e+00> : vector<16xf32>
    %15 = vector.multi_reduction <add>, %14, %cst_9 [1] : vector<16x32xf32> to vector<16xf32>
    %16 = vector.shape_cast %15 : vector<16xf32> to vector<16x1xf32>
    %cst_10 = arith.constant 3.200000e+01 : f32
    %17 = vector.broadcast %cst_10 : f32 to vector<16x1xf32>
    %18 = arith.divf %16, %17 : vector<16x1xf32>
    %19 = vector.broadcast %11 : vector<16x1xf32> to vector<16x32xf32>
    %20 = arith.subf %3, %19 : vector<16x32xf32>
    %cst_11 = arith.constant 9.99999974E-6 : f32
    %21 = vector.broadcast %cst_11 : f32 to vector<16x1xf32>
    %22 = arith.addf %18, %21 : vector<16x1xf32>
    %23 = math.rsqrt %22 : vector<16x1xf32>
    %24 = vector.broadcast %23 : vector<16x1xf32> to vector<16x32xf32>
    %25 = arith.mulf %20, %24 : vector<16x32xf32>
    %26 = vector.broadcast %5 : vector<1x32xf32> to vector<16x32xf32>
    %27 = arith.mulf %25, %26 : vector<16x32xf32>
    %28 = vector.broadcast %7 : vector<1x32xf32> to vector<16x32xf32>
    %29 = arith.addf %27, %28 : vector<16x32xf32>
    %30 = arith.truncf %29 : vector<16x32xf32> to vector<16x32xbf16>
    %c0_12 = arith.constant 0 : index
    %c0_13 = arith.constant 0 : index
    %c0_14 = arith.constant 0 : index
    %31 = vector.load %arg7[%c0_12, %c0_13, %c0_14] : memref<1x32x160xbf16, #tpu.memory_space<vmem>>, vector<1x32x160xbf16>
    %32 = vector.shape_cast %31 : vector<1x32x160xbf16> to vector<32x160xbf16>
    %cst_15 = arith.constant dense<0.000000e+00> : vector<16x160xf32>
    %33 = tpu.matmul %30, %32, %cst_15 {dimension_numbers = #tpu.dot_dimension_numbers<[1], [0], [0], [1], [0, 0, 1, 1], [], []>} : vector<16x32xbf16>, vector<32x160xbf16>, vector<16x160xf32> -> vector<16x160xf32>
    %c0_16 = arith.constant 0 : index
    %c0_17 = arith.constant 0 : index
    %c0_18 = arith.constant 0 : index
    %34 = vector.load %arg8[%c0_16, %c0_17, %c0_18] : memref<1x1x160xf32, #tpu.memory_space<vmem>>, vector<1x1x160xf32>
    %35 = vector.shape_cast %34 : vector<1x1x160xf32> to vector<1x160xf32>
    %36 = vector.broadcast %35 : vector<1x160xf32> to vector<16x160xf32>
    %37 = arith.addf %33, %36 : vector<16x160xf32>
    %c0_19 = arith.constant 0 : index
    %c0_20 = arith.constant 0 : index
    %38 = vector.load %arg3[%c0_19, %c0_20] : memref<16x32xf32, #tpu.memory_space<vmem>>, vector<16x32xf32>
    %c0_21 = arith.constant 0 : index
    %c0_22 = arith.constant 0 : index
    %39 = vector.load %arg4[%c0_21, %c0_22] : memref<16x32xf32, #tpu.memory_space<vmem>>, vector<16x32xf32>
    %40 = vector.extract_strided_slice %37 {offsets = [0, 0], sizes = [16, 32], strides = [1, 1]} : vector<16x160xf32> to vector<16x32xf32>
    %41 = arith.mulf %40, %38 : vector<16x32xf32>
    %42 = vector.extract_strided_slice %37 {offsets = [0, 32], sizes = [16, 32], strides = [1, 1]} : vector<16x160xf32> to vector<16x32xf32>
    %43 = arith.mulf %42, %39 : vector<16x32xf32>
    %44 = arith.addf %41, %43 : vector<16x32xf32>
    %45 = vector.extract_strided_slice %37 {offsets = [0, 64], sizes = [16, 32], strides = [1, 1]} : vector<16x160xf32> to vector<16x32xf32>
    %46 = arith.mulf %45, %38 : vector<16x32xf32>
    %47 = vector.extract_strided_slice %37 {offsets = [0, 96], sizes = [16, 32], strides = [1, 1]} : vector<16x160xf32> to vector<16x32xf32>
    %48 = arith.mulf %47, %39 : vector<16x32xf32>
    %49 = arith.addf %46, %48 : vector<16x32xf32>
    %50 = vector.extract_strided_slice %37 {offsets = [0, 128], sizes = [16, 32], strides = [1, 1]} : vector<16x160xf32> to vector<16x32xf32>
    %51 = arith.truncf %44 : vector<16x32xf32> to vector<16x32xbf16>
    %52 = arith.truncf %49 : vector<16x32xf32> to vector<16x32xbf16>
    %53 = arith.truncf %50 : vector<16x32xf32> to vector<16x32xbf16>
    %c0_23 = arith.constant 0 : index
    %c0_24 = arith.constant 0 : index
    %54 = vector.load %arg2[%c0_23, %c0_24] : memref<2x8xf32, #tpu.memory_space<vmem>>, vector<2x8xf32>
    %55 = vector.extract_strided_slice %54 {offsets = [0, 0], sizes = [1, 8], strides = [1, 1]} : vector<2x8xf32> to vector<1x8xf32>
    %56 = vector.extract_strided_slice %51 {offsets = [0, 0], sizes = [8, 8], strides = [1, 1]} : vector<16x32xbf16> to vector<8x8xbf16>
    %57 = vector.extract_strided_slice %52 {offsets = [0, 0], sizes = [8, 8], strides = [1, 1]} : vector<16x32xbf16> to vector<8x8xbf16>
    %58 = vector.extract_strided_slice %53 {offsets = [0, 0], sizes = [8, 8], strides = [1, 1]} : vector<16x32xbf16> to vector<8x8xbf16>
    %cst_25 = arith.constant dense<0.000000e+00> : vector<8x8xf32>
    %59 = tpu.matmul %56, %57, %cst_25 {dimension_numbers = #tpu.dot_dimension_numbers<[1], [1], [0], [0], [0, 0, 1, 0], [], []>} : vector<8x8xbf16>, vector<8x8xbf16>, vector<8x8xf32> -> vector<8x8xf32>
    %60 = vector.broadcast %55 : vector<1x8xf32> to vector<8x8xf32>
    %61 = arith.addf %59, %60 : vector<8x8xf32>
    %cst_26 = arith.constant dense<0xFF800000> : vector<8xf32>
    %62 = vector.multi_reduction <maximumf>, %61, %cst_26 [1] : vector<8x8xf32> to vector<8xf32>
    %63 = vector.shape_cast %62 : vector<8xf32> to vector<8x1xf32>
    %64 = vector.broadcast %63 : vector<8x1xf32> to vector<8x8xf32>
    %65 = arith.subf %61, %64 : vector<8x8xf32>
    %66 = math.exp %65 : vector<8x8xf32>
    %cst_27 = arith.constant dense<0.000000e+00> : vector<8xf32>
    %67 = vector.multi_reduction <add>, %66, %cst_27 [1] : vector<8x8xf32> to vector<8xf32>
    %68 = vector.shape_cast %67 : vector<8xf32> to vector<8x1xf32>
    %69 = tpu.reciprocal %68 {approx = true} : vector<8x1xf32> -> vector<8x1xf32>
    %70 = vector.broadcast %69 : vector<8x1xf32> to vector<8x8xf32>
    %71 = arith.mulf %66, %70 : vector<8x8xf32>
    %72 = arith.truncf %71 : vector<8x8xf32> to vector<8x8xbf16>
    %cst_28 = arith.constant dense<0.000000e+00> : vector<8x8xf32>
    %73 = tpu.matmul %72, %58, %cst_28 {dimension_numbers = #tpu.dot_dimension_numbers<[1], [0], [0], [1], [0, 0, 1, 1], [], []>} : vector<8x8xbf16>, vector<8x8xbf16>, vector<8x8xf32> -> vector<8x8xf32>
    %c0_29 = arith.constant 0 : index
    %c0_30 = arith.constant 0 : index
    %74 = vector.load %arg29[%c0_29, %c0_30] : memref<16x32xf32, #tpu.memory_space<vmem>>, vector<8x8xf32>
    tpu.vector_store %arg29[%c0_29, %c0_30], %73 {strides = array<i32>} : memref<16x32xf32, #tpu.memory_space<vmem>>, vector<8x8xf32>,
    %75 = vector.extract_strided_slice %51 {offsets = [0, 8], sizes = [8, 8], strides = [1, 1]} : vector<16x32xbf16> to vector<8x8xbf16>
    %76 = vector.extract_strided_slice %52 {offsets = [0, 8], sizes = [8, 8], strides = [1, 1]} : vector<16x32xbf16> to vector<8x8xbf16>
    %77 = vector.extract_strided_slice %53 {offsets = [0, 8], sizes = [8, 8], strides = [1, 1]} : vector<16x32xbf16> to vector<8x8xbf16>
    %cst_31 = arith.constant dense<0.000000e+00> : vector<8x8xf32>
    %78 = tpu.matmul %75, %76, %cst_31 {dimension_numbers = #tpu.dot_dimension_numbers<[1], [1], [0], [0], [0, 0, 1, 0], [], []>} : vector<8x8xbf16>, vector<8x8xbf16>, vector<8x8xf32> -> vector<8x8xf32>
    %79 = vector.broadcast %55 : vector<1x8xf32> to vector<8x8xf32>
    %80 = arith.addf %78, %79 : vector<8x8xf32>
    %cst_32 = arith.constant dense<0xFF800000> : vector<8xf32>
    %81 = vector.multi_reduction <maximumf>, %80, %cst_32 [1] : vector<8x8xf32> to vector<8xf32>
    %82 = vector.shape_cast %81 : vector<8xf32> to vector<8x1xf32>
    %83 = vector.broadcast %82 : vector<8x1xf32> to vector<8x8xf32>
    %84 = arith.subf %80, %83 : vector<8x8xf32>
    %85 = math.exp %84 : vector<8x8xf32>
    %cst_33 = arith.constant dense<0.000000e+00> : vector<8xf32>
    %86 = vector.multi_reduction <add>, %85, %cst_33 [1] : vector<8x8xf32> to vector<8xf32>
    %87 = vector.shape_cast %86 : vector<8xf32> to vector<8x1xf32>
    %88 = tpu.reciprocal %87 {approx = true} : vector<8x1xf32> -> vector<8x1xf32>
    %89 = vector.broadcast %88 : vector<8x1xf32> to vector<8x8xf32>
    %90 = arith.mulf %85, %89 : vector<8x8xf32>
    %91 = arith.truncf %90 : vector<8x8xf32> to vector<8x8xbf16>
    %cst_34 = arith.constant dense<0.000000e+00> : vector<8x8xf32>
    %92 = tpu.matmul %91, %77, %cst_34 {dimension_numbers = #tpu.dot_dimension_numbers<[1], [0], [0], [1], [0, 0, 1, 1], [], []>} : vector<8x8xbf16>, vector<8x8xbf16>, vector<8x8xf32> -> vector<8x8xf32>
    %c0_35 = arith.constant 0 : index
    %c8 = arith.constant 8 : index
    %93 = vector.load %arg29[%c0_35, %c8] : memref<16x32xf32, #tpu.memory_space<vmem>>, vector<8x8xf32>
    tpu.vector_store %arg29[%c0_35, %c8], %92 {strides = array<i32>} : memref<16x32xf32, #tpu.memory_space<vmem>>, vector<8x8xf32>,
    %94 = vector.extract_strided_slice %51 {offsets = [0, 16], sizes = [8, 8], strides = [1, 1]} : vector<16x32xbf16> to vector<8x8xbf16>
    %95 = vector.extract_strided_slice %52 {offsets = [0, 16], sizes = [8, 8], strides = [1, 1]} : vector<16x32xbf16> to vector<8x8xbf16>
    %96 = vector.extract_strided_slice %53 {offsets = [0, 16], sizes = [8, 8], strides = [1, 1]} : vector<16x32xbf16> to vector<8x8xbf16>
    %cst_36 = arith.constant dense<0.000000e+00> : vector<8x8xf32>
    %97 = tpu.matmul %94, %95, %cst_36 {dimension_numbers = #tpu.dot_dimension_numbers<[1], [1], [0], [0], [0, 0, 1, 0], [], []>} : vector<8x8xbf16>, vector<8x8xbf16>, vector<8x8xf32> -> vector<8x8xf32>
    %98 = vector.broadcast %55 : vector<1x8xf32> to vector<8x8xf32>
    %99 = arith.addf %97, %98 : vector<8x8xf32>
    %cst_37 = arith.constant dense<0xFF800000> : vector<8xf32>
    %100 = vector.multi_reduction <maximumf>, %99, %cst_37 [1] : vector<8x8xf32> to vector<8xf32>
    %101 = vector.shape_cast %100 : vector<8xf32> to vector<8x1xf32>
    %102 = vector.broadcast %101 : vector<8x1xf32> to vector<8x8xf32>
    %103 = arith.subf %99, %102 : vector<8x8xf32>
    %104 = math.exp %103 : vector<8x8xf32>
    %cst_38 = arith.constant dense<0.000000e+00> : vector<8xf32>
    %105 = vector.multi_reduction <add>, %104, %cst_38 [1] : vector<8x8xf32> to vector<8xf32>
    %106 = vector.shape_cast %105 : vector<8xf32> to vector<8x1xf32>
    %107 = tpu.reciprocal %106 {approx = true} : vector<8x1xf32> -> vector<8x1xf32>
    %108 = vector.broadcast %107 : vector<8x1xf32> to vector<8x8xf32>
    %109 = arith.mulf %104, %108 : vector<8x8xf32>
    %110 = arith.truncf %109 : vector<8x8xf32> to vector<8x8xbf16>
    %cst_39 = arith.constant dense<0.000000e+00> : vector<8x8xf32>
    %111 = tpu.matmul %110, %96, %cst_39 {dimension_numbers = #tpu.dot_dimension_numbers<[1], [0], [0], [1], [0, 0, 1, 1], [], []>} : vector<8x8xbf16>, vector<8x8xbf16>, vector<8x8xf32> -> vector<8x8xf32>
    %c0_40 = arith.constant 0 : index
    %c16 = arith.constant 16 : index
    %112 = vector.load %arg29[%c0_40, %c16] : memref<16x32xf32, #tpu.memory_space<vmem>>, vector<8x8xf32>
    tpu.vector_store %arg29[%c0_40, %c16], %111 {strides = array<i32>} : memref<16x32xf32, #tpu.memory_space<vmem>>, vector<8x8xf32>,
    %113 = vector.extract_strided_slice %51 {offsets = [0, 24], sizes = [8, 8], strides = [1, 1]} : vector<16x32xbf16> to vector<8x8xbf16>
    %114 = vector.extract_strided_slice %52 {offsets = [0, 24], sizes = [8, 8], strides = [1, 1]} : vector<16x32xbf16> to vector<8x8xbf16>
    %115 = vector.extract_strided_slice %53 {offsets = [0, 24], sizes = [8, 8], strides = [1, 1]} : vector<16x32xbf16> to vector<8x8xbf16>
    %cst_41 = arith.constant dense<0.000000e+00> : vector<8x8xf32>
    %116 = tpu.matmul %113, %114, %cst_41 {dimension_numbers = #tpu.dot_dimension_numbers<[1], [1], [0], [0], [0, 0, 1, 0], [], []>} : vector<8x8xbf16>, vector<8x8xbf16>, vector<8x8xf32> -> vector<8x8xf32>
    %117 = vector.broadcast %55 : vector<1x8xf32> to vector<8x8xf32>
    %118 = arith.addf %116, %117 : vector<8x8xf32>
    %cst_42 = arith.constant dense<0xFF800000> : vector<8xf32>
    %119 = vector.multi_reduction <maximumf>, %118, %cst_42 [1] : vector<8x8xf32> to vector<8xf32>
    %120 = vector.shape_cast %119 : vector<8xf32> to vector<8x1xf32>
    %121 = vector.broadcast %120 : vector<8x1xf32> to vector<8x8xf32>
    %122 = arith.subf %118, %121 : vector<8x8xf32>
    %123 = math.exp %122 : vector<8x8xf32>
    %cst_43 = arith.constant dense<0.000000e+00> : vector<8xf32>
    %124 = vector.multi_reduction <add>, %123, %cst_43 [1] : vector<8x8xf32> to vector<8xf32>
    %125 = vector.shape_cast %124 : vector<8xf32> to vector<8x1xf32>
    %126 = tpu.reciprocal %125 {approx = true} : vector<8x1xf32> -> vector<8x1xf32>
    %127 = vector.broadcast %126 : vector<8x1xf32> to vector<8x8xf32>
    %128 = arith.mulf %123, %127 : vector<8x8xf32>
    %129 = arith.truncf %128 : vector<8x8xf32> to vector<8x8xbf16>
    %cst_44 = arith.constant dense<0.000000e+00> : vector<8x8xf32>
    %130 = tpu.matmul %129, %115, %cst_44 {dimension_numbers = #tpu.dot_dimension_numbers<[1], [0], [0], [1], [0, 0, 1, 1], [], []>} : vector<8x8xbf16>, vector<8x8xbf16>, vector<8x8xf32> -> vector<8x8xf32>
    %c0_45 = arith.constant 0 : index
    %c24 = arith.constant 24 : index
    %131 = vector.load %arg29[%c0_45, %c24] : memref<16x32xf32, #tpu.memory_space<vmem>>, vector<8x8xf32>
    tpu.vector_store %arg29[%c0_45, %c24], %130 {strides = array<i32>} : memref<16x32xf32, #tpu.memory_space<vmem>>, vector<8x8xf32>,
    %132 = vector.extract_strided_slice %54 {offsets = [1, 0], sizes = [1, 8], strides = [1, 1]} : vector<2x8xf32> to vector<1x8xf32>
    %133 = vector.extract_strided_slice %51 {offsets = [8, 0], sizes = [8, 8], strides = [1, 1]} : vector<16x32xbf16> to vector<8x8xbf16>
    %134 = vector.extract_strided_slice %52 {offsets = [8, 0], sizes = [8, 8], strides = [1, 1]} : vector<16x32xbf16> to vector<8x8xbf16>
    %135 = vector.extract_strided_slice %53 {offsets = [8, 0], sizes = [8, 8], strides = [1, 1]} : vector<16x32xbf16> to vector<8x8xbf16>
    %cst_46 = arith.constant dense<0.000000e+00> : vector<8x8xf32>
    %136 = tpu.matmul %133, %134, %cst_46 {dimension_numbers = #tpu.dot_dimension_numbers<[1], [1], [0], [0], [0, 0, 1, 0], [], []>} : vector<8x8xbf16>, vector<8x8xbf16>, vector<8x8xf32> -> vector<8x8xf32>
    %137 = vector.broadcast %132 : vector<1x8xf32> to vector<8x8xf32>
    %138 = arith.addf %136, %137 : vector<8x8xf32>
    %cst_47 = arith.constant dense<0xFF800000> : vector<8xf32>
    %139 = vector.multi_reduction <maximumf>, %138, %cst_47 [1] : vector<8x8xf32> to vector<8xf32>
    %140 = vector.shape_cast %139 : vector<8xf32> to vector<8x1xf32>
    %141 = vector.broadcast %140 : vector<8x1xf32> to vector<8x8xf32>
    %142 = arith.subf %138, %141 : vector<8x8xf32>
    %143 = math.exp %142 : vector<8x8xf32>
    %cst_48 = arith.constant dense<0.000000e+00> : vector<8xf32>
    %144 = vector.multi_reduction <add>, %143, %cst_48 [1] : vector<8x8xf32> to vector<8xf32>
    %145 = vector.shape_cast %144 : vector<8xf32> to vector<8x1xf32>
    %146 = tpu.reciprocal %145 {approx = true} : vector<8x1xf32> -> vector<8x1xf32>
    %147 = vector.broadcast %146 : vector<8x1xf32> to vector<8x8xf32>
    %148 = arith.mulf %143, %147 : vector<8x8xf32>
    %149 = arith.truncf %148 : vector<8x8xf32> to vector<8x8xbf16>
    %cst_49 = arith.constant dense<0.000000e+00> : vector<8x8xf32>
    %150 = tpu.matmul %149, %135, %cst_49 {dimension_numbers = #tpu.dot_dimension_numbers<[1], [0], [0], [1], [0, 0, 1, 1], [], []>} : vector<8x8xbf16>, vector<8x8xbf16>, vector<8x8xf32> -> vector<8x8xf32>
    %c8_50 = arith.constant 8 : index
    %c0_51 = arith.constant 0 : index
    %151 = vector.load %arg29[%c8_50, %c0_51] : memref<16x32xf32, #tpu.memory_space<vmem>>, vector<8x8xf32>
    tpu.vector_store %arg29[%c8_50, %c0_51], %150 {strides = array<i32>} : memref<16x32xf32, #tpu.memory_space<vmem>>, vector<8x8xf32>,
    %152 = vector.extract_strided_slice %51 {offsets = [8, 8], sizes = [8, 8], strides = [1, 1]} : vector<16x32xbf16> to vector<8x8xbf16>
    %153 = vector.extract_strided_slice %52 {offsets = [8, 8], sizes = [8, 8], strides = [1, 1]} : vector<16x32xbf16> to vector<8x8xbf16>
    %154 = vector.extract_strided_slice %53 {offsets = [8, 8], sizes = [8, 8], strides = [1, 1]} : vector<16x32xbf16> to vector<8x8xbf16>
    %cst_52 = arith.constant dense<0.000000e+00> : vector<8x8xf32>
    %155 = tpu.matmul %152, %153, %cst_52 {dimension_numbers = #tpu.dot_dimension_numbers<[1], [1], [0], [0], [0, 0, 1, 0], [], []>} : vector<8x8xbf16>, vector<8x8xbf16>, vector<8x8xf32> -> vector<8x8xf32>
    %156 = vector.broadcast %132 : vector<1x8xf32> to vector<8x8xf32>
    %157 = arith.addf %155, %156 : vector<8x8xf32>
    %cst_53 = arith.constant dense<0xFF800000> : vector<8xf32>
    %158 = vector.multi_reduction <maximumf>, %157, %cst_53 [1] : vector<8x8xf32> to vector<8xf32>
    %159 = vector.shape_cast %158 : vector<8xf32> to vector<8x1xf32>
    %160 = vector.broadcast %159 : vector<8x1xf32> to vector<8x8xf32>
    %161 = arith.subf %157, %160 : vector<8x8xf32>
    %162 = math.exp %161 : vector<8x8xf32>
    %cst_54 = arith.constant dense<0.000000e+00> : vector<8xf32>
    %163 = vector.multi_reduction <add>, %162, %cst_54 [1] : vector<8x8xf32> to vector<8xf32>
    %164 = vector.shape_cast %163 : vector<8xf32> to vector<8x1xf32>
    %165 = tpu.reciprocal %164 {approx = true} : vector<8x1xf32> -> vector<8x1xf32>
    %166 = vector.broadcast %165 : vector<8x1xf32> to vector<8x8xf32>
    %167 = arith.mulf %162, %166 : vector<8x8xf32>
    %168 = arith.truncf %167 : vector<8x8xf32> to vector<8x8xbf16>
    %cst_55 = arith.constant dense<0.000000e+00> : vector<8x8xf32>
    %169 = tpu.matmul %168, %154, %cst_55 {dimension_numbers = #tpu.dot_dimension_numbers<[1], [0], [0], [1], [0, 0, 1, 1], [], []>} : vector<8x8xbf16>, vector<8x8xbf16>, vector<8x8xf32> -> vector<8x8xf32>
    %c8_56 = arith.constant 8 : index
    %c8_57 = arith.constant 8 : index
    %170 = vector.load %arg29[%c8_56, %c8_57] : memref<16x32xf32, #tpu.memory_space<vmem>>, vector<8x8xf32>
    tpu.vector_store %arg29[%c8_56, %c8_57], %169 {strides = array<i32>} : memref<16x32xf32, #tpu.memory_space<vmem>>, vector<8x8xf32>,
    %171 = vector.extract_strided_slice %51 {offsets = [8, 16], sizes = [8, 8], strides = [1, 1]} : vector<16x32xbf16> to vector<8x8xbf16>
    %172 = vector.extract_strided_slice %52 {offsets = [8, 16], sizes = [8, 8], strides = [1, 1]} : vector<16x32xbf16> to vector<8x8xbf16>
    %173 = vector.extract_strided_slice %53 {offsets = [8, 16], sizes = [8, 8], strides = [1, 1]} : vector<16x32xbf16> to vector<8x8xbf16>
    %cst_58 = arith.constant dense<0.000000e+00> : vector<8x8xf32>
    %174 = tpu.matmul %171, %172, %cst_58 {dimension_numbers = #tpu.dot_dimension_numbers<[1], [1], [0], [0], [0, 0, 1, 0], [], []>} : vector<8x8xbf16>, vector<8x8xbf16>, vector<8x8xf32> -> vector<8x8xf32>
    %175 = vector.broadcast %132 : vector<1x8xf32> to vector<8x8xf32>
    %176 = arith.addf %174, %175 : vector<8x8xf32>
    %cst_59 = arith.constant dense<0xFF800000> : vector<8xf32>
    %177 = vector.multi_reduction <maximumf>, %176, %cst_59 [1] : vector<8x8xf32> to vector<8xf32>
    %178 = vector.shape_cast %177 : vector<8xf32> to vector<8x1xf32>
    %179 = vector.broadcast %178 : vector<8x1xf32> to vector<8x8xf32>
    %180 = arith.subf %176, %179 : vector<8x8xf32>
    %181 = math.exp %180 : vector<8x8xf32>
    %cst_60 = arith.constant dense<0.000000e+00> : vector<8xf32>
    %182 = vector.multi_reduction <add>, %181, %cst_60 [1] : vector<8x8xf32> to vector<8xf32>
    %183 = vector.shape_cast %182 : vector<8xf32> to vector<8x1xf32>
    %184 = tpu.reciprocal %183 {approx = true} : vector<8x1xf32> -> vector<8x1xf32>
    %185 = vector.broadcast %184 : vector<8x1xf32> to vector<8x8xf32>
    %186 = arith.mulf %181, %185 : vector<8x8xf32>
    %187 = arith.truncf %186 : vector<8x8xf32> to vector<8x8xbf16>
    %cst_61 = arith.constant dense<0.000000e+00> : vector<8x8xf32>
    %188 = tpu.matmul %187, %173, %cst_61 {dimension_numbers = #tpu.dot_dimension_numbers<[1], [0], [0], [1], [0, 0, 1, 1], [], []>} : vector<8x8xbf16>, vector<8x8xbf16>, vector<8x8xf32> -> vector<8x8xf32>
    %c8_62 = arith.constant 8 : index
    %c16_63 = arith.constant 16 : index
    %189 = vector.load %arg29[%c8_62, %c16_63] : memref<16x32xf32, #tpu.memory_space<vmem>>, vector<8x8xf32>
    tpu.vector_store %arg29[%c8_62, %c16_63], %188 {strides = array<i32>} : memref<16x32xf32, #tpu.memory_space<vmem>>, vector<8x8xf32>,
    %190 = vector.extract_strided_slice %51 {offsets = [8, 24], sizes = [8, 8], strides = [1, 1]} : vector<16x32xbf16> to vector<8x8xbf16>
    %191 = vector.extract_strided_slice %52 {offsets = [8, 24], sizes = [8, 8], strides = [1, 1]} : vector<16x32xbf16> to vector<8x8xbf16>
    %192 = vector.extract_strided_slice %53 {offsets = [8, 24], sizes = [8, 8], strides = [1, 1]} : vector<16x32xbf16> to vector<8x8xbf16>
    %cst_64 = arith.constant dense<0.000000e+00> : vector<8x8xf32>
    %193 = tpu.matmul %190, %191, %cst_64 {dimension_numbers = #tpu.dot_dimension_numbers<[1], [1], [0], [0], [0, 0, 1, 0], [], []>} : vector<8x8xbf16>, vector<8x8xbf16>, vector<8x8xf32> -> vector<8x8xf32>
    %194 = vector.broadcast %132 : vector<1x8xf32> to vector<8x8xf32>
    %195 = arith.addf %193, %194 : vector<8x8xf32>
    %cst_65 = arith.constant dense<0xFF800000> : vector<8xf32>
    %196 = vector.multi_reduction <maximumf>, %195, %cst_65 [1] : vector<8x8xf32> to vector<8xf32>
    %197 = vector.shape_cast %196 : vector<8xf32> to vector<8x1xf32>
    %198 = vector.broadcast %197 : vector<8x1xf32> to vector<8x8xf32>
    %199 = arith.subf %195, %198 : vector<8x8xf32>
    %200 = math.exp %199 : vector<8x8xf32>
    %cst_66 = arith.constant dense<0.000000e+00> : vector<8xf32>
    %201 = vector.multi_reduction <add>, %200, %cst_66 [1] : vector<8x8xf32> to vector<8xf32>
    %202 = vector.shape_cast %201 : vector<8xf32> to vector<8x1xf32>
    %203 = tpu.reciprocal %202 {approx = true} : vector<8x1xf32> -> vector<8x1xf32>
    %204 = vector.broadcast %203 : vector<8x1xf32> to vector<8x8xf32>
    %205 = arith.mulf %200, %204 : vector<8x8xf32>
    %206 = arith.truncf %205 : vector<8x8xf32> to vector<8x8xbf16>
    %cst_67 = arith.constant dense<0.000000e+00> : vector<8x8xf32>
    %207 = tpu.matmul %206, %192, %cst_67 {dimension_numbers = #tpu.dot_dimension_numbers<[1], [0], [0], [1], [0, 0, 1, 1], [], []>} : vector<8x8xbf16>, vector<8x8xbf16>, vector<8x8xf32> -> vector<8x8xf32>
    %c8_68 = arith.constant 8 : index
    %c24_69 = arith.constant 24 : index
    %208 = vector.load %arg29[%c8_68, %c24_69] : memref<16x32xf32, #tpu.memory_space<vmem>>, vector<8x8xf32>
    tpu.vector_store %arg29[%c8_68, %c24_69], %207 {strides = array<i32>} : memref<16x32xf32, #tpu.memory_space<vmem>>, vector<8x8xf32>,
    %c0_70 = arith.constant 0 : index
    %c0_71 = arith.constant 0 : index
    %209 = vector.load %arg29[%c0_70, %c0_71] : memref<16x32xf32, #tpu.memory_space<vmem>>, vector<16x32xf32>
    %210 = arith.truncf %209 : vector<16x32xf32> to vector<16x32xbf16>
    %c0_72 = arith.constant 0 : index
    %c0_73 = arith.constant 0 : index
    %c0_74 = arith.constant 0 : index
    %211 = vector.load %arg9[%c0_72, %c0_73, %c0_74] : memref<1x32x32xbf16, #tpu.memory_space<vmem>>, vector<1x32x32xbf16>
    %212 = vector.shape_cast %211 : vector<1x32x32xbf16> to vector<32x32xbf16>
    %cst_75 = arith.constant dense<0.000000e+00> : vector<16x32xf32>
    %213 = tpu.matmul %210, %212, %cst_75 {dimension_numbers = #tpu.dot_dimension_numbers<[1], [0], [0], [1], [0, 0, 1, 1], [], []>} : vector<16x32xbf16>, vector<32x32xbf16>, vector<16x32xf32> -> vector<16x32xf32>
    %c0_76 = arith.constant 0 : index
    %c0_77 = arith.constant 0 : index
    %c0_78 = arith.constant 0 : index
    %214 = vector.load %arg10[%c0_76, %c0_77, %c0_78] : memref<1x1x32xf32, #tpu.memory_space<vmem>>, vector<1x1x32xf32>
    %215 = vector.shape_cast %214 : vector<1x1x32xf32> to vector<1x32xf32>
    %216 = vector.broadcast %215 : vector<1x32xf32> to vector<16x32xf32>
    %217 = arith.addf %213, %216 : vector<16x32xf32>
    %218 = arith.addf %3, %217 : vector<16x32xf32>
    %c0_79 = arith.constant 0 : index
    %c0_80 = arith.constant 0 : index
    %c0_81 = arith.constant 0 : index
    %219 = vector.load %arg11[%c0_79, %c0_80, %c0_81] : memref<1x1x32xf32, #tpu.memory_space<vmem>>, vector<1x1x32xf32>
    %220 = vector.shape_cast %219 : vector<1x1x32xf32> to vector<1x32xf32>
    %c0_82 = arith.constant 0 : index
    %c0_83 = arith.constant 0 : index
    %c0_84 = arith.constant 0 : index
    %221 = vector.load %arg12[%c0_82, %c0_83, %c0_84] : memref<1x1x32xf32, #tpu.memory_space<vmem>>, vector<1x1x32xf32>
    %222 = vector.shape_cast %221 : vector<1x1x32xf32> to vector<1x32xf32>
    %cst_85 = arith.constant dense<0.000000e+00> : vector<16xf32>
    %223 = vector.multi_reduction <add>, %218, %cst_85 [1] : vector<16x32xf32> to vector<16xf32>
    %224 = vector.shape_cast %223 : vector<16xf32> to vector<16x1xf32>
    %cst_86 = arith.constant 3.200000e+01 : f32
    %225 = vector.broadcast %cst_86 : f32 to vector<16x1xf32>
    %226 = arith.divf %224, %225 : vector<16x1xf32>
    %227 = vector.broadcast %226 : vector<16x1xf32> to vector<16x32xf32>
    %228 = arith.subf %218, %227 : vector<16x32xf32>
    %229 = arith.mulf %228, %228 : vector<16x32xf32>
    %cst_87 = arith.constant dense<0.000000e+00> : vector<16xf32>
    %230 = vector.multi_reduction <add>, %229, %cst_87 [1] : vector<16x32xf32> to vector<16xf32>
    %231 = vector.shape_cast %230 : vector<16xf32> to vector<16x1xf32>
    %cst_88 = arith.constant 3.200000e+01 : f32
    %232 = vector.broadcast %cst_88 : f32 to vector<16x1xf32>
    %233 = arith.divf %231, %232 : vector<16x1xf32>
    %234 = vector.broadcast %226 : vector<16x1xf32> to vector<16x32xf32>
    %235 = arith.subf %218, %234 : vector<16x32xf32>
    %cst_89 = arith.constant 9.99999974E-6 : f32
    %236 = vector.broadcast %cst_89 : f32 to vector<16x1xf32>
    %237 = arith.addf %233, %236 : vector<16x1xf32>
    %238 = math.rsqrt %237 : vector<16x1xf32>
    %239 = vector.broadcast %238 : vector<16x1xf32> to vector<16x32xf32>
    %240 = arith.mulf %235, %239 : vector<16x32xf32>
    %241 = vector.broadcast %220 : vector<1x32xf32> to vector<16x32xf32>
    %242 = arith.mulf %240, %241 : vector<16x32xf32>
    %243 = vector.broadcast %222 : vector<1x32xf32> to vector<16x32xf32>
    %244 = arith.addf %242, %243 : vector<16x32xf32>
    %245 = arith.truncf %244 : vector<16x32xf32> to vector<16x32xbf16>
    %c0_90 = arith.constant 0 : index
    %c0_91 = arith.constant 0 : index
    %c0_92 = arith.constant 0 : index
    %246 = vector.load %arg13[%c0_90, %c0_91, %c0_92] : memref<1x32x64xbf16, #tpu.memory_space<vmem>>, vector<1x32x64xbf16>
    %247 = vector.shape_cast %246 : vector<1x32x64xbf16> to vector<32x64xbf16>
    %cst_93 = arith.constant dense<0.000000e+00> : vector<16x64xf32>
    %248 = tpu.matmul %245, %247, %cst_93 {dimension_numbers = #tpu.dot_dimension_numbers<[1], [0], [0], [1], [0, 0, 1, 1], [], []>} : vector<16x32xbf16>, vector<32x64xbf16>, vector<16x64xf32> -> vector<16x64xf32>
    %c0_94 = arith.constant 0 : index
    %c0_95 = arith.constant 0 : index
    %c0_96 = arith.constant 0 : index
    %249 = vector.load %arg14[%c0_94, %c0_95, %c0_96] : memref<1x1x64xf32, #tpu.memory_space<vmem>>, vector<1x1x64xf32>
    %250 = vector.shape_cast %249 : vector<1x1x64xf32> to vector<1x64xf32>
    %251 = vector.broadcast %250 : vector<1x64xf32> to vector<16x64xf32>
    %252 = arith.addf %248, %251 : vector<16x64xf32>
    %cst_97 = arith.constant 5.000000e-01 : f32
    %253 = vector.broadcast %cst_97 : f32 to vector<16x64xf32>
    %254 = arith.mulf %252, %253 : vector<16x64xf32>
    %cst_98 = arith.constant 1.41421354 : f32
    %255 = vector.broadcast %cst_98 : f32 to vector<16x64xf32>
    %256 = arith.divf %252, %255 : vector<16x64xf32>
    %257 = math.erf %256 : vector<16x64xf32>
    %cst_99 = arith.constant 1.000000e+00 : f32
    %258 = vector.broadcast %cst_99 : f32 to vector<16x64xf32>
    %259 = arith.addf %258, %257 : vector<16x64xf32>
    %260 = arith.mulf %254, %259 : vector<16x64xf32>
    %261 = arith.truncf %260 : vector<16x64xf32> to vector<16x64xbf16>
    %c0_100 = arith.constant 0 : index
    %c0_101 = arith.constant 0 : index
    %c0_102 = arith.constant 0 : index
    %262 = vector.load %arg15[%c0_100, %c0_101, %c0_102] : memref<1x64x32xbf16, #tpu.memory_space<vmem>>, vector<1x64x32xbf16>
    %263 = vector.shape_cast %262 : vector<1x64x32xbf16> to vector<64x32xbf16>
    %cst_103 = arith.constant dense<0.000000e+00> : vector<16x32xf32>
    %264 = tpu.matmul %261, %263, %cst_103 {dimension_numbers = #tpu.dot_dimension_numbers<[1], [0], [0], [1], [0, 0, 1, 1], [], []>} : vector<16x64xbf16>, vector<64x32xbf16>, vector<16x32xf32> -> vector<16x32xf32>
    %265 = arith.addf %218, %264 : vector<16x32xf32>
    %c0_104 = arith.constant 0 : index
    %c0_105 = arith.constant 0 : index
    %c0_106 = arith.constant 0 : index
    %266 = vector.load %arg16[%c0_104, %c0_105, %c0_106] : memref<1x1x32xf32, #tpu.memory_space<vmem>>, vector<1x1x32xf32>
    %267 = vector.shape_cast %266 : vector<1x1x32xf32> to vector<1x32xf32>
    %268 = vector.broadcast %267 : vector<1x32xf32> to vector<16x32xf32>
    %269 = arith.addf %265, %268 : vector<16x32xf32>
    %c0_107 = arith.constant 0 : index
    %c0_108 = arith.constant 0 : index
    %270 = vector.load %arg28[%c0_107, %c0_108] : memref<16x32xf32, #tpu.memory_space<vmem>>, vector<16x32xf32>
    tpu.vector_store %arg28[%c0_107, %c0_108], %269 {strides = array<i32>} : memref<16x32xf32, #tpu.memory_space<vmem>>, vector<16x32xf32>,
    %c0_109 = arith.constant 0 : index
    %c0_110 = arith.constant 0 : index
    %c0_111 = arith.constant 0 : index
    %271 = vector.load %arg25[%c0_109, %c0_110, %c0_111] : memref<1x16x32xf32, #tpu.memory_space<vmem>>, vector<1x16x32xf32>
    %272 = vector.shape_cast %271 : vector<1x16x32xf32> to vector<16x32xf32>
    %273 = vector.shape_cast %269 : vector<16x32xf32> to vector<1x16x32xf32>
    tpu.vector_store %arg25[%c0_109, %c0_110, %c0_111], %273 {strides = array<i32>} : memref<1x16x32xf32, #tpu.memory_space<vmem>>, vector<1x16x32xf32>,
    %c1_i32 = arith.constant 1 : i32
    %274 = arith.cmpi eq, %arg0, %c1_i32 : i32
    %275 = arith.extui %274 : i1 to i32
    %c0_i32_112 = arith.constant 0 : i32
    %276 = arith.cmpi ne, %275, %c0_i32_112 : i32
    scf.if %276 {
      %c0_113 = arith.constant 0 : index
      %c0_114 = arith.constant 0 : index
      %277 = vector.load %arg17[%c0_113, %c0_114] : memref<1x32xf32, #tpu.memory_space<vmem>>, vector<1x32xf32>
      %c0_115 = arith.constant 0 : index
      %c0_116 = arith.constant 0 : index
      %278 = vector.load %arg18[%c0_115, %c0_116] : memref<1x32xf32, #tpu.memory_space<vmem>>, vector<1x32xf32>
      %cst_117 = arith.constant dense<0.000000e+00> : vector<16xf32>
      %279 = vector.multi_reduction <add>, %269, %cst_117 [1] : vector<16x32xf32> to vector<16xf32>
      %280 = vector.shape_cast %279 : vector<16xf32> to vector<16x1xf32>
      %cst_118 = arith.constant 3.200000e+01 : f32
      %281 = vector.broadcast %cst_118 : f32 to vector<16x1xf32>
      %282 = arith.divf %280, %281 : vector<16x1xf32>
      %283 = vector.broadcast %282 : vector<16x1xf32> to vector<16x32xf32>
      %284 = arith.subf %269, %283 : vector<16x32xf32>
      %285 = arith.mulf %284, %284 : vector<16x32xf32>
      %cst_119 = arith.constant dense<0.000000e+00> : vector<16xf32>
      %286 = vector.multi_reduction <add>, %285, %cst_119 [1] : vector<16x32xf32> to vector<16xf32>
      %287 = vector.shape_cast %286 : vector<16xf32> to vector<16x1xf32>
      %cst_120 = arith.constant 3.200000e+01 : f32
      %288 = vector.broadcast %cst_120 : f32 to vector<16x1xf32>
      %289 = arith.divf %287, %288 : vector<16x1xf32>
      %290 = vector.broadcast %282 : vector<16x1xf32> to vector<16x32xf32>
      %291 = arith.subf %269, %290 : vector<16x32xf32>
      %cst_121 = arith.constant 9.99999974E-6 : f32
      %292 = vector.broadcast %cst_121 : f32 to vector<16x1xf32>
      %293 = arith.addf %289, %292 : vector<16x1xf32>
      %294 = math.rsqrt %293 : vector<16x1xf32>
      %295 = vector.broadcast %294 : vector<16x1xf32> to vector<16x32xf32>
      %296 = arith.mulf %291, %295 : vector<16x32xf32>
      %297 = vector.broadcast %277 : vector<1x32xf32> to vector<16x32xf32>
      %298 = arith.mulf %296, %297 : vector<16x32xf32>
      %299 = vector.broadcast %278 : vector<1x32xf32> to vector<16x32xf32>
      %300 = arith.addf %298, %299 : vector<16x32xf32>
      %c0_122 = arith.constant 0 : index
      %c0_123 = arith.constant 0 : index
      %301 = vector.load %arg26[%c0_122, %c0_123] : memref<16x32xf32, #tpu.memory_space<vmem>>, vector<16x32xf32>
      tpu.vector_store %arg26[%c0_122, %c0_123], %300 {strides = array<i32>} : memref<16x32xf32, #tpu.memory_space<vmem>>, vector<16x32xf32>,
      %302 = arith.truncf %300 : vector<16x32xf32> to vector<16x32xbf16>
      %c0_124 = arith.constant 0 : index
      %c0_125 = arith.constant 0 : index
      %303 = vector.load %arg19[%c0_124, %c0_125] : memref<32x32xbf16, #tpu.memory_space<vmem>>, vector<32x32xbf16>
      %cst_126 = arith.constant dense<0.000000e+00> : vector<16x32xf32>
      %304 = tpu.matmul %302, %303, %cst_126 {dimension_numbers = #tpu.dot_dimension_numbers<[1], [0], [0], [1], [0, 0, 1, 1], [], []>} : vector<16x32xbf16>, vector<32x32xbf16>, vector<16x32xf32> -> vector<16x32xf32>
      %c0_127 = arith.constant 0 : index
      %c0_128 = arith.constant 0 : index
      %305 = vector.load %arg20[%c0_127, %c0_128] : memref<1x32xf32, #tpu.memory_space<vmem>>, vector<1x32xf32>
      %306 = vector.broadcast %305 : vector<1x32xf32> to vector<16x32xf32>
      %307 = arith.addf %304, %306 : vector<16x32xf32>
      %cst_129 = arith.constant 5.000000e-01 : f32
      %308 = vector.broadcast %cst_129 : f32 to vector<16x32xf32>
      %309 = arith.mulf %307, %308 : vector<16x32xf32>
      %cst_130 = arith.constant 1.41421354 : f32
      %310 = vector.broadcast %cst_130 : f32 to vector<16x32xf32>
      %311 = arith.divf %307, %310 : vector<16x32xf32>
      %312 = math.erf %311 : vector<16x32xf32>
      %cst_131 = arith.constant 1.000000e+00 : f32
      %313 = vector.broadcast %cst_131 : f32 to vector<16x32xf32>
      %314 = arith.addf %313, %312 : vector<16x32xf32>
      %315 = arith.mulf %309, %314 : vector<16x32xf32>
      %c0_132 = arith.constant 0 : index
      %c0_133 = arith.constant 0 : index
      %316 = vector.load %arg21[%c0_132, %c0_133] : memref<1x32xf32, #tpu.memory_space<vmem>>, vector<1x32xf32>
      %c0_134 = arith.constant 0 : index
      %c0_135 = arith.constant 0 : index
      %317 = vector.load %arg22[%c0_134, %c0_135] : memref<1x32xf32, #tpu.memory_space<vmem>>, vector<1x32xf32>
      %cst_136 = arith.constant dense<0.000000e+00> : vector<16xf32>
      %318 = vector.multi_reduction <add>, %315, %cst_136 [1] : vector<16x32xf32> to vector<16xf32>
      %319 = vector.shape_cast %318 : vector<16xf32> to vector<16x1xf32>
      %cst_137 = arith.constant 3.200000e+01 : f32
      %320 = vector.broadcast %cst_137 : f32 to vector<16x1xf32>
      %321 = arith.divf %319, %320 : vector<16x1xf32>
      %322 = vector.broadcast %321 : vector<16x1xf32> to vector<16x32xf32>
      %323 = arith.subf %315, %322 : vector<16x32xf32>
      %324 = arith.mulf %323, %323 : vector<16x32xf32>
      %cst_138 = arith.constant dense<0.000000e+00> : vector<16xf32>
      %325 = vector.multi_reduction <add>, %324, %cst_138 [1] : vector<16x32xf32> to vector<16xf32>
      %326 = vector.shape_cast %325 : vector<16xf32> to vector<16x1xf32>
      %cst_139 = arith.constant 3.200000e+01 : f32
      %327 = vector.broadcast %cst_139 : f32 to vector<16x1xf32>
      %328 = arith.divf %326, %327 : vector<16x1xf32>
      %329 = vector.broadcast %321 : vector<16x1xf32> to vector<16x32xf32>
      %330 = arith.subf %315, %329 : vector<16x32xf32>
      %cst_140 = arith.constant 9.99999974E-6 : f32
      %331 = vector.broadcast %cst_140 : f32 to vector<16x1xf32>
      %332 = arith.addf %328, %331 : vector<16x1xf32>
      %333 = math.rsqrt %332 : vector<16x1xf32>
      %334 = vector.broadcast %333 : vector<16x1xf32> to vector<16x32xf32>
      %335 = arith.mulf %330, %334 : vector<16x32xf32>
      %336 = vector.broadcast %316 : vector<1x32xf32> to vector<16x32xf32>
      %337 = arith.mulf %335, %336 : vector<16x32xf32>
      %338 = vector.broadcast %317 : vector<1x32xf32> to vector<16x32xf32>
      %339 = arith.addf %337, %338 : vector<16x32xf32>
      %340 = arith.truncf %339 : vector<16x32xf32> to vector<16x32xbf16>
      %c0_141 = arith.constant 0 : index
      %c0_142 = arith.constant 0 : index
      %341 = vector.load %arg23[%c0_141, %c0_142] : memref<32x128xbf16, #tpu.memory_space<vmem>>, vector<32x128xbf16>
      %cst_143 = arith.constant dense<0.000000e+00> : vector<16x128xf32>
      %342 = tpu.matmul %340, %341, %cst_143 {dimension_numbers = #tpu.dot_dimension_numbers<[1], [0], [0], [1], [0, 0, 1, 1], [], []>} : vector<16x32xbf16>, vector<32x128xbf16>, vector<16x128xf32> -> vector<16x128xf32>
      %c0_144 = arith.constant 0 : index
      %c0_145 = arith.constant 0 : index
      %343 = vector.load %arg24[%c0_144, %c0_145] : memref<1x128xf32, #tpu.memory_space<vmem>>, vector<1x128xf32>
      %344 = vector.broadcast %343 : vector<1x128xf32> to vector<16x128xf32>
      %345 = arith.addf %342, %344 : vector<16x128xf32>
      %c0_146 = arith.constant 0 : index
      %c0_147 = arith.constant 0 : index
      %346 = vector.load %arg27[%c0_146, %c0_147] : memref<16x128xf32, #tpu.memory_space<vmem>>, vector<16x128xf32>
      tpu.vector_store %arg27[%c0_146, %c0_147], %345 {strides = array<i32>} : memref<16x128xf32, #tpu.memory_space<vmem>>, vector<16x128xf32>,
    } else {
    }
    return
  }
  func.func @transform_0(%arg0: i32) -> (i32, i32) {
    %c0_i32 = arith.constant 0 : i32
    %c0_i32_0 = arith.constant 0 : i32
    %c0_i32_1 = arith.constant 0 : i32
    return %c0_i32, %c0_i32_0 : i32, i32
  }
  func.func @transform_1(%arg0: i32) -> (i32, i32) {
    %c0_i32 = arith.constant 0 : i32
    %c0_i32_0 = arith.constant 0 : i32
    %c0_i32_1 = arith.constant 0 : i32
    return %c0_i32, %c0_i32_0 : i32, i32
  }
  func.func @transform_2(%arg0: i32) -> (i32, i32) {
    %c0_i32 = arith.constant 0 : i32
    %c0_i32_0 = arith.constant 0 : i32
    %c0_i32_1 = arith.constant 0 : i32
    return %c0_i32, %c0_i32_0 : i32, i32
  }
  func.func @transform_3(%arg0: i32) -> (i32, i32) {
    %c0_i32 = arith.constant 0 : i32
    %c0_i32_0 = arith.constant 0 : i32
    %c0_i32_1 = arith.constant 0 : i32
    return %c0_i32, %c0_i32_0 : i32, i32
  }
  func.func @transform_4(%arg0: i32) -> (i32, i32, i32) {
    %c0_i32 = arith.constant 0 : i32
    %c0_i32_0 = arith.constant 0 : i32
    %c0_i32_1 = arith.constant 0 : i32
    return %arg0, %c0_i32, %c0_i32_0 : i32, i32, i32
  }
  func.func @transform_5(%arg0: i32) -> (i32, i32, i32) {
    %c0_i32 = arith.constant 0 : i32
    %c0_i32_0 = arith.constant 0 : i32
    %c0_i32_1 = arith.constant 0 : i32
    return %arg0, %c0_i32, %c0_i32_0 : i32, i32, i32
  }
  func.func @transform_6(%arg0: i32) -> (i32, i32, i32) {
    %c0_i32 = arith.constant 0 : i32
    %c0_i32_0 = arith.constant 0 : i32
    %c0_i32_1 = arith.constant 0 : i32
    return %arg0, %c0_i32, %c0_i32_0 : i32, i32, i32
  }
  func.func @transform_7(%arg0: i32) -> (i32, i32, i32) {
    %c0_i32 = arith.constant 0 : i32
    %c0_i32_0 = arith.constant 0 : i32
    %c0_i32_1 = arith.constant 0 : i32
    return %arg0, %c0_i32, %c0_i32_0 : i32, i32, i32
  }
  func.func @transform_8(%arg0: i32) -> (i32, i32, i32) {
    %c0_i32 = arith.constant 0 : i32
    %c0_i32_0 = arith.constant 0 : i32
    %c0_i32_1 = arith.constant 0 : i32
    return %arg0, %c0_i32, %c0_i32_0 : i32, i32, i32
  }
  func.func @transform_9(%arg0: i32) -> (i32, i32, i32) {
    %c0_i32 = arith.constant 0 : i32
    %c0_i32_0 = arith.constant 0 : i32
    %c0_i32_1 = arith.constant 0 : i32
    return %arg0, %c0_i32, %c0_i32_0 : i32, i32, i32
  }
  func.func @transform_10(%arg0: i32) -> (i32, i32, i32) {
    %c0_i32 = arith.constant 0 : i32
    %c0_i32_0 = arith.constant 0 : i32
    %c0_i32_1 = arith.constant 0 : i32
    return %arg0, %c0_i32, %c0_i32_0 : i32, i32, i32
  }
  func.func @transform_11(%arg0: i32) -> (i32, i32, i32) {
    %c0_i32 = arith.constant 0 : i32
    %c0_i32_0 = arith.constant 0 : i32
    %c0_i32_1 = arith.constant 0 : i32
    return %arg0, %c0_i32, %c0_i32_0 : i32, i32, i32
  }
  func.func @transform_12(%arg0: i32) -> (i32, i32, i32) {
    %c0_i32 = arith.constant 0 : i32
    %c0_i32_0 = arith.constant 0 : i32
    %c0_i32_1 = arith.constant 0 : i32
    return %arg0, %c0_i32, %c0_i32_0 : i32, i32, i32
  }
  func.func @transform_13(%arg0: i32) -> (i32, i32, i32) {
    %c0_i32 = arith.constant 0 : i32
    %c0_i32_0 = arith.constant 0 : i32
    %c0_i32_1 = arith.constant 0 : i32
    return %arg0, %c0_i32, %c0_i32_0 : i32, i32, i32
  }
  func.func @transform_14(%arg0: i32) -> (i32, i32, i32) {
    %c0_i32 = arith.constant 0 : i32
    %c0_i32_0 = arith.constant 0 : i32
    %c0_i32_1 = arith.constant 0 : i32
    return %arg0, %c0_i32, %c0_i32_0 : i32, i32, i32
  }
  func.func @transform_15(%arg0: i32) -> (i32, i32, i32) {
    %c0_i32 = arith.constant 0 : i32
    %c0_i32_0 = arith.constant 0 : i32
    %c0_i32_1 = arith.constant 0 : i32
    return %arg0, %c0_i32, %c0_i32_0 : i32, i32, i32
  }
  func.func @transform_16(%arg0: i32) -> (i32, i32) {
    %c0_i32 = arith.constant 0 : i32
    %c0_i32_0 = arith.constant 0 : i32
    %c0_i32_1 = arith.constant 0 : i32
    return %c0_i32, %c0_i32_0 : i32, i32
  }
  func.func @transform_17(%arg0: i32) -> (i32, i32) {
    %c0_i32 = arith.constant 0 : i32
    %c0_i32_0 = arith.constant 0 : i32
    %c0_i32_1 = arith.constant 0 : i32
    return %c0_i32, %c0_i32_0 : i32, i32
  }
  func.func @transform_18(%arg0: i32) -> (i32, i32) {
    %c0_i32 = arith.constant 0 : i32
    %c0_i32_0 = arith.constant 0 : i32
    %c0_i32_1 = arith.constant 0 : i32
    return %c0_i32, %c0_i32_0 : i32, i32
  }
  func.func @transform_19(%arg0: i32) -> (i32, i32) {
    %c0_i32 = arith.constant 0 : i32
    %c0_i32_0 = arith.constant 0 : i32
    %c0_i32_1 = arith.constant 0 : i32
    return %c0_i32, %c0_i32_0 : i32, i32
  }
  func.func @transform_20(%arg0: i32) -> (i32, i32) {
    %c0_i32 = arith.constant 0 : i32
    %c0_i32_0 = arith.constant 0 : i32
    %c0_i32_1 = arith.constant 0 : i32
    return %c0_i32, %c0_i32_0 : i32, i32
  }
  func.func @transform_21(%arg0: i32) -> (i32, i32) {
    %c0_i32 = arith.constant 0 : i32
    %c0_i32_0 = arith.constant 0 : i32
    %c0_i32_1 = arith.constant 0 : i32
    return %c0_i32, %c0_i32_0 : i32, i32
  }
  func.func @transform_22(%arg0: i32) -> (i32, i32) {
    %c0_i32 = arith.constant 0 : i32
    %c0_i32_0 = arith.constant 0 : i32
    %c0_i32_1 = arith.constant 0 : i32
    return %c0_i32, %c0_i32_0 : i32, i32
  }
  func.func @transform_23(%arg0: i32) -> (i32, i32) {
    %c0_i32 = arith.constant 0 : i32
    %c0_i32_0 = arith.constant 0 : i32
    %c0_i32_1 = arith.constant 0 : i32
    return %c0_i32, %c0_i32_0 : i32, i32
  }
  func.func @transform_24(%arg0: i32) -> (i32, i32, i32) {
    %c0_i32 = arith.constant 0 : i32
    %c0_i32_0 = arith.constant 0 : i32
    %c0_i32_1 = arith.constant 0 : i32
    return %arg0, %c0_i32, %c0_i32_0 : i32, i32, i32
  }
  func.func @transform_25(%arg0: i32) -> (i32, i32) {
    %c0_i32 = arith.constant 0 : i32
    %c0_i32_0 = arith.constant 0 : i32
    %c0_i32_1 = arith.constant 0 : i32
    return %c0_i32, %c0_i32_0 : i32, i32
  }
  func.func @transform_26(%arg0: i32) -> (i32, i32) {
    %c0_i32 = arith.constant 0 : i32
    %c0_i32_0 = arith.constant 0 : i32
    %c0_i32_1 = arith.constant 0 : i32
    return %c0_i32, %c0_i32_0 : i32, i32
  }
}

</mosaic_0001>

<bundles_post_ra>
// kernel: esm2_forward.1
= control target key start
LH: loop header
LB: loop body
LE: loop exit
PB: predicated region body
PF: predicated region fallthrough
CT: control target
= control target key end

     0   :  { %s3844_s0 = inlined_call_operand.vmem [shape: f32[16,32], index: 0, kind: input, shape index: {}]   ;;  %s3845_s1 = inlined_call_operand.vmem [shape: f32[2,8], index: 1, kind: input, shape index: {}]   ;;  %s3846_s2 = inlined_call_operand.vmem [shape: f32[16,32], index: 2, kind: input, shape index: {}]   ;;  %s3847_s3 = inlined_call_operand.vmem [shape: f32[16,32], index: 3, kind: input, shape index: {}]   ;;  %s3848_s4 = inlined_call_operand.vmem [shape: f32[2,1,32], index: 4, kind: input, shape index: {}]   ;;  %s3849_s5 = inlined_call_operand.vmem [shape: f32[2,1,32], index: 5, kind: input, shape index: {}]   ;;  %s3850_s6 = inlined_call_operand.vmem [shape: bf16[2,32,160], index: 6, kind: input, shape index: {}]   ;;  %s3851_s7 = inlined_call_operand.vmem [shape: f32[2,1,160], index: 7, kind: input, shape index: {}]   ;;  %s3852_s8 = inlined_call_operand.vmem [shape: bf16[2,32,32], index: 8, kind: input, shape index: {}]   ;;  %s3853_s9 = inlined_call_operand.vmem [shape: f32[2,1,32], index: 9, kind: input, shape index: {}]   ;;  %s3854_s10 = inlined_call_operand.vmem [shape: f32[2,1,32], index: 10, kind: input, shape index: {}]   ;;  %s3855_s11 = inlined_call_operand.vmem [shape: f32[2,1,32], index: 11, kind: input, shape index: {}]   ;;  %s3856_s12 = inlined_call_operand.vmem [shape: bf16[2,32,64], index: 12, kind: input, shape index: {}]   ;;  %s3857_s13 = inlined_call_operand.vmem [shape: f32[2,1,64], index: 13, kind: input, shape index: {}]   ;;  %s3858_s14 = inlined_call_operand.vmem [shape: bf16[2,64,32], index: 14, kind: input, shape index: {}]   ;;  %s3859_s15 = inlined_call_operand.vmem [shape: f32[2,1,32], index: 15, kind: input, shape index: {}]   ;;  %s3860_s16 = inlined_call_operand.vmem [shape: f32[1,32], index: 16, kind: input, shape index: {}]   ;;  %s3861_s17 = inlined_call_operand.vmem [shape: f32[1,32], index: 17, kind: input, shape index: {}]   ;;  %s3862_s18 = inlined_call_operand.vmem [shape: bf16[32,32], index: 18, kind: input, shape index: {}]   ;;  %s3863_s19 = inlined_call_operand.vmem [shape: f32[1,32], index: 19, kind: input, shape index: {}]   ;;  %s3864_s20 = inlined_call_operand.vmem [shape: f32[1,32], index: 20, kind: input, shape index: {}]   ;;  %s3865_s21 = inlined_call_operand.vmem [shape: f32[1,32], index: 21, kind: input, shape index: {}]   ;;  %s3866_s22 = inlined_call_operand.vmem [shape: bf16[32,128], index: 22, kind: input, shape index: {}]   ;;  %s3867_s23 = inlined_call_operand.vmem [shape: f32[1,128], index: 23, kind: input, shape index: {}]   ;;  %s3868_s24 = inlined_call_operand.vmem [shape: f32[2,16,32], index: 24, kind: output, shape index: {0}]   ;;  %s3869_s25 = inlined_call_operand.hbm [shape: f32[16,32], index: 25, kind: output, shape index: {1}]   ;;  %s3870_s26 = inlined_call_operand.vmem [shape: f32[16,128], index: 26, kind: output, shape index: {2}]  }
   0x1   :  { %3878 = sst [smem:[#allocation8_spill]] %s3844_s0 }
   0x2   :  { %3879 = sst [smem:[#allocation9_spill]] %s3845_s1 }
   0x3   :  { %3880 = sst [smem:[#allocation10_spill]] %s3846_s2 }
   0x4   :  { %3881 = sst [smem:[#allocation11_spill]] %s3847_s3 }
   0x5   :  { %3882 = sst [smem:[#allocation12_spill]] %s3848_s4 }
   0x6   :  { %3883 = sst [smem:[#allocation13_spill]] %s3849_s5 }
   0x7   :  { %3884 = sst [smem:[#allocation14_spill]] %s3850_s6 }
   0x8   :  { %3885 = sst [smem:[#allocation15_spill]] %s3851_s7 }
   0x9   :  { %3886 = sst [smem:[#allocation16_spill]] %s3852_s8 }
   0xa   :  { %3887 = sst [smem:[#allocation17_spill]] %s3853_s9 }
   0xb   :  { %3888 = sst [smem:[#allocation18_spill]] %s3854_s10 }
   0xc   :  { %3889 = sst [smem:[#allocation19_spill]] %s3860_s16 }
   0xd   :  { %3890 = sst [smem:[#allocation20_spill]] %s3861_s17 }
   0xe   :  { %3891 = sst [smem:[#allocation21_spill]] %s3863_s19 }
   0xf   :  { %3892 = sst [smem:[#allocation22_spill]] %s3864_s20 }
  0x10   :  { %3893 = sst [smem:[#allocation23_spill]] %s3865_s21 }
  0x11   :  { %3894 = sst [smem:[#allocation24_spill]] %s3866_s22 }
  0x12   :  { %3895 = sst [smem:[#allocation25_spill]] %s3867_s23 }
  0x13   :  { %3896 = sst [smem:[#allocation26_spill]] %s3869_s25 }
  0x14   :  { %3897 = sst [smem:[#allocation27_spill]] %s3870_s26 }
  0x15   :  { %32 = vsyncpa [#allocation5], 0  ;;  %s3379_s27 = smov 0  }
  0x16 LB: > { %3898 = sst [smem:[#allocation7_spill]] %s3223_s27  ;;  %s3385_s3 = sadd.s32 4294967295, %s3223_s27   ;;  %s3223_s27 = sphi %s3379_s27, %s38_s27  }
  0x17   : > { %p2817_p0 = scmp.ge.s32.totalorder %s3223_s27, 1  ;;  %p803_p1 = scmp.lt.s32.totalorder %s3223_s27, 3 }
  0x19   : > { %p804_p2 = pnand %p2817_p0, %p803_p1 }
  0x1a   : > { %p913_p3 = scmp.lt.s32.totalorder (!%p804_p2), %s3385_s3, 1  ;;  %s3901_s27 = sld [smem:[#allocation14_spill]] (!%p804_p2) }
  0x1b   : > { %807 = sbr.rel (%p804_p2) target bundleno = 3899 (0xf3b), region = 116  ;;  %s3902_s26 = sld [smem:[#allocation15_spill]] (!%p804_p2) }
  0x1c   : > { %s3903_s4 = sld [smem:[#allocation17_spill]] (!%p804_p2)  ;;  %s3904_s9 = sld [smem:[#allocation16_spill]] (!%p804_p2) }
  0x1d   : > { %s3905_s6 = sld [smem:[#allocation18_spill]] (!%p804_p2)  ;;  %p2829_p4 = scmp.ne.s32.totalorder (!%p804_p2), %s3385_s3, 0 }
  0x22   : > { %s3391_s7 = scalar_select %p913_p3, %s3385_s3, 1 }
  0x23   : > { %s3906_s20 = sld [smem:[#allocation8_spill]] (!%p2829_p4)  ;;  %vm970_vm0 = vcmask (!%p2829_p4), 261120  }
  0x24   : > { %s2886_s5 = sshll.u32 %s3391_s7, 5  ;;  %s2820_s10 = sshll.u32 %s3391_s7, 1 }
  0x25   : > { %s3406_s28 = scalar_lea.vmem %s3901_s27, %s2886_s5  ;;  %s3411_s23 = scalar_lea.vmem %s3902_s26, %s2820_s10 }
  0x26   : > { %s2887_s21 = sshll.u32 %s3391_s7, 4  ;;  %s935_s29 = scalar_lea.vmem %s3903_s4, %s3391_s7 }
  0x27   : > { %s3421_s30 = scalar_lea.vmem %s3904_s9, %s2887_s21  ;;  %s938_s27 = scalar_lea.vmem %s3905_s6, %s3391_s7 }
  0x28   : > { %s3434_s8 = scalar_lea.vmem %s3856_s12, %s2887_s21  ;;  %s949_s4 = scalar_lea.vmem %s3857_s13, %s3391_s7 }
  0x29   : > { %s3443_s9 = scalar_lea.vmem %s3858_s14, %s2886_s5  ;;  %s957_s6 = scalar_lea.vmem %s3859_s15, %s3391_s7  ;;  %v968_v0 = vld [vmem:[%s3906_s20] sm:$0xff] (!%p2829_p4)  ;;  %v969_v1 = vld [vmem:[%s3906_s20 + $0x8] sm:$0xff] (!%p2829_p4) }
  0x2a   : > { %s3452_s25 = scalar_lea.vmem %s3868_s24, %s2887_s21  ;;  %967 = sbr.rel (%p2829_p4) target bundleno = 49 (0x31), region = 120  ;;  %971 = vst.msk [vmem:[#allocation2] sm:$0xff] (!%p2829_p4), %vm970_vm0, %v968_v0  ;;  %972 = vst.msk [vmem:[#allocation2 + $0x8] sm:$0xff] (!%p2829_p4), %vm970_vm0, %v969_v1 }
  0x31 PF: > { %v3461_v2 = vld [vmem:[#allocation2] sm:$0xff]  ;;  %vm977_vm1 = vcmask 261120   ;;  %v3463_v3 = vld [vmem:[#allocation2 + $0x8] sm:$0xff]  ;;  %v3116_v18 = vld [vmem:[%s3406_s28 + $0x14] ss:$8 sps:$4 sm:$0xff]   ;;  %v3225_v20 = vmov 0   ;;  %v1028_v43 = vlaneseq }
  0x32   : > { %v978_v4 = vsel %vm977_vm1, %v3461_v2, 0.0  ;;  %v981_v5 = vsel %vm977_vm1, %v3463_v3, 0.0  ;;  %v3113_v16 = vld [vmem:[%s3406_s28 + $0x4] ss:$8 sps:$4 sm:$0xff]   ;;  %v3115_v17 = vld [vmem:[%s3406_s28] ss:$8 sps:$4 sm:$0xff]   ;;  %1093 = vmatprep.mubr.bf16.mxu0 %v3225_v20 }
  0x33   : > { %979 = vadd.xlane.f32.xlu0 %v978_v4  ;;  %1061 = vmatprep.subr.bf16.mxu0 %v3113_v16  ;;  %v3118_v19 = vld [vmem:[%s3406_s28 + $0x10] ss:$8 sps:$4 sm:$0xff]   ;;  %s3907_s0 = sld [smem:[#allocation11_spill]]  ;;  %s3226_s16 = smov 96   ;;  %v3229_v42 = vmov 0.0   ;;  %v3512_v44 = vshrl.u32 %v1028_v43, 7 }
  0x34   : > { %1062 = vmatpush1.bf16.msra.mxu0 %v3115_v17  ;;  %s3908_s28 = sld [smem:[#allocation10_spill]]  ;;  %s3227_s10 = smov 32   ;;  %2940 = vmatprep.subr.bf16.mxu1 %v3229_v42  ;;  %v1026_v46 = vld [vmem:[%s3411_s23] sm:$0x3]  ;;  %vm1231_vm2 = vcmask 1043456   ;;  %vm3230_vm3 = vmmov 0  }
  0x35   : > { %1063 = vmatprep.subr.bf16.mxu0 %v3116_v18  ;;  %s3228_s22 = smov 64   ;;  %s3909_s2 = sld [smem:[#allocation12_spill]]  ;;  %v1030_v45 = vsub.s32 0, %v3512_v44  ;;  %v1034_v48 = vsub.s32 1, %v3512_v44  ;;  %2942 = vmatprep.mubr.msk.bf16.mxu1 %vm3230_vm3, %v3229_v42  ;;  %vm1169_vm4 = vcmask 64512   ;;  %vm1392_vm5 = vcmask 130112  }
  0x36   : > { %s3911_s5 = sld [smem:[#allocation13_spill]]  ;;  %s3231_s23 = smov 56   ;;  %vm1508_vm6 = vcmask 195712   ;;  %vm1624_vm7 = vcmask 261312   ;;  %vm2313_vm8 = vcmask 523264  }
  0x37   : > { %982 = vadd.xlane.f32.xlu0 %v981_v5  ;;  %v1031_v49 = vrot.slane %v1026_v46, %v1030_v45  ;;  %v1035_v51 = vrot.slane %v1026_v46, %v1034_v48  ;;  %s3233_s19 = smov 120   ;;  %s3234_s17 = smov 40  }
  0x38   : > { %1064 = vmatpush1.bf16.msra.mxu0 %v3118_v19  ;;  %p2869_p5 = scmp.ne.s32.totalorder %s3385_s3, 1 }
  0x39   : > { %v1107_v21 = vld [vmem:[%s3907_s0 + $0x8] sm:$0xff]  ;;  %v1106_v22 = vld [vmem:[%s3907_s0] sm:$0xff]  ;;  %2946 = vmatprep.subr.bf16.mxu0 %v3229_v42  ;;  %vm3241_vm9 = vmmov (!%p2869_p5), 0  }
  0x3a   : > { %v3488_v23 = vld [vmem:[%s3908_s28] sm:$0xff]  ;;  %v3495_v24 = vld [vmem:[%s3908_s28 + $0x8] sm:$0xff] }
  0x3b   : > { %s3910_s1 = scalar_lea.vmem %s3909_s2, %s3391_s7  ;;  %s3235_s2 = smov 112  }
  0x3c   : > { %v2830_v33 = vld [vmem:[%s3910_s1] ss:$0 sm:$0xff]  ;;  %s3912_s21 = scalar_lea.vmem %s3911_s5, %s3391_s7  ;;  %s3236_s1 = smov 104  }
  0x3d   : > { %v2831_v37 = vld [vmem:[%s3912_s21] ss:$0 sm:$0xff]  ;;  %s3237_s5 = smov 8   ;;  %s3238_s21 = smov 16  }
  0x4d   : > { %1140 = vrot.lane.b32.xlu0 %v1106_v22, %s3226_s16 }
  0x51   : > { %1132 = vrot.lane.b32.xlu0 %v3488_v23, %s3228_s22 }
  0xc0   : > { %v980_v6 = vpop.xlane.xlu0 %979 }
  0xc1   : > { %v985_v7 = vmul.f32 0.03125, %v980_v6 }
  0xc3   : > { %v987_v8 = vsub.f32 %v3461_v2, %v985_v7 }
  0xc4   : > { %v983_v9 = vpop.xlane.xlu0 %982 }
  0xc5   : > { %v986_v10 = vmul.f32 0.03125, %v983_v9  ;;  %v989_v11 = vmul.f32 %v987_v8, %v987_v8 }
  0xc7   : > { %v988_v12 = vsub.f32 %v3463_v3, %v986_v10  ;;  %v991_v13 = vsel %vm977_vm1, %v989_v11, 0.0 }
  0xc8   : > { %992 = vadd.xlane.f32.xlu1 %v991_v13  ;;  %v1141_v52 = vpop.permute.xlu0 %1140 }
  0xc9   : > { %v990_v14 = vmul.f32 %v988_v12, %v988_v12 }
  0xcb   : > { %v994_v15 = vsel %vm977_vm1, %v990_v14, 0.0 }
  0xcc   : > { %995 = vadd.xlane.f32.xlu1 %v994_v15  ;;  %v1133_v6 = vpop.permute.xlu0 %1132 }
  0xdd   : > { %1142 = vrot.lane.b32.xlu1 %v1107_v21, %s3226_s16 }
  0xe1   : > { %1112 = vrot.lane.b32.xlu1 %v1106_v22, %s3227_s10 }
  0xe5   : > { %1114 = vrot.lane.b32.xlu1 %v1107_v21, %s3227_s10  ;;  %s3913_s10 = sld [smem:[#allocation9_spill]] }
  0xe9   : > { %1134 = vrot.lane.b32.xlu1 %v3495_v24, %s3228_s22 }
 0x155   : > { %v993_v25 = vpop.xlane.xlu1 %992 }
 0x156   : > { %v997_v26 = vmul.f32 0.03125, %v993_v25 }
 0x158   : > { %v999_v27 = vadd.f32 1e-05, %v997_v26 }
 0x159   : > { %v996_v28 = vpop.xlane.xlu1 %995 }
 0x15a   : > { %3127 = vrsqrt.f32 %v999_v27  ;;  %v998_v29 = vmul.f32 0.03125, %v996_v28 }
 0x15c   : > { %v1000_v30 = vadd.f32 1e-05, %v998_v29 }
 0x15d   : > { %v1143_v47 = vpop.permute.xlu1 %1142 }
 0x15e   : > { %3129 = vrsqrt.f32 %v1000_v30 }
 0x161   : > { %v1113_v55 = vpop.permute.xlu1 %1112 }
 0x164   : > { %v3128_v31 = vpop.eup %3127 }
 0x165   : > { %v1003_v32 = vmul.f32 %v3128_v31, %v987_v8  ;;  %v1115_v1 = vpop.permute.xlu1 %1114 }
 0x167   : > { %v1011_v36 = vmul.f32 %v2830_v33, %v1003_v32 }
 0x168   : > { %v3130_v34 = vpop.eup %3129 }
 0x169   : > { %v1004_v35 = vmul.f32 %v3130_v34, %v988_v12  ;;  %v1019_v39 = vadd.f32 %v2831_v37, %v1011_v36  ;;  %v1135_v7 = vpop.permute.xlu1 %1134 }
 0x16b   : > { %v1012_v38 = vmul.f32 %v2830_v33, %v1004_v35 }
 0x16d   : > { %v1020_v40 = vadd.f32 %v2831_v37, %v1012_v38 }
 0x16f   : > { %v1021_v41 = vpack.c.bf16 %v1020_v40, %v1019_v39 }
 0x171   : > { %2836 = vmatmul.mubr.msk.bf16.vlgmr.msra.gmra.mrb[0].mxu0 %vm977_vm1, %v1021_v41 }
 0x172   : > { %2948 = vmatprep.mubr.msk.bf16.mxu0 %vm3230_vm3, %v3229_v42 }
 0x244   : > { %v1095_v50 = vpop.f32.mrb[0].mxu0 }
 0x245   : > { %v1096_v53 = vadd.f32 %v1095_v50, %v1031_v49  ;;  %v1097_v54 = vpop.f32.mrb[1].mxu0  ;;  %v1161_v50 = vld [vmem:[%s3913_s10] sm:$0x3] }
 0x246   : > { %v1099_v56 = vpop.f32.mrb[2].mxu0  ;;  %v1098_v60 = vadd.f32 %v1097_v54, %v1035_v51 }
 0x247   : > { %v1100_v57 = vadd.f32 %v1099_v56, %v1031_v49  ;;  %v1101_v58 = vpop.f32.mrb[3].mxu0  ;;  %v1146_v59 = vmul.f32 %v1141_v52, %v1096_v53  ;;  %v1118_v0 = vmul.f32 %v1113_v55, %v1096_v53  ;;  %v1138_v9 = vmul.f32 %v1133_v6, %v1096_v53 }
 0x248   : > { %v1102_v61 = vadd.f32 %v1101_v58, %v1035_v51  ;;  %v1108_v16 = vmul.f32 %v3488_v23, %v1096_v53  ;;  %v1165_v51 = vrot.slane %v1161_v50, %v1030_v45 }
 0x249   : > { %1150 = vrot.lane.b32.xlu0 %v1146_v59, %s3226_s16  ;;  %v1147_v62 = vmul.f32 %v1143_v47, %v1100_v57  ;;  %v1119_v5 = vmul.f32 %v1115_v1, %v1100_v57  ;;  %v1139_v10 = vmul.f32 %v1135_v7, %v1100_v57  ;;  %v1109_v17 = vmul.f32 %v3495_v24, %v1100_v57 }
 0x24a   : > { %v3522_v63 = vpack.c.bf16 %v1102_v61, %v1098_v60 }
 0x24b   : > { %1152 = vrot.lane.b32.xlu1 %v1147_v62, %s3226_s16 }
 0x24c   : > { %v1233_v4 = vsel %vm1231_vm2, %v3522_v63, 0 }
 0x24d   : > { %2947 = vmatpush3.bf16.msra.mxu0 %v1233_v4  ;;  %1122 = vrot.lane.b32.xlu0 %v1118_v0, %s3226_s16 }
 0x24e   : > { %2958 = vmatprep.subr.bf16.mxu0 %v3229_v42 }
 0x24f   : > { %1124 = vrot.lane.b32.xlu1 %v1119_v5, %s3226_s16  ;;  %s3232_s16 = smov 48  }
 0x2bb   : > { %v1151_v8 = vpop.permute.xlu0 %1150 }
 0x2bc   : > { %v1156_v12 = vadd.f32 %v1151_v8, %v1138_v9 }
 0x2bd   : > { %v1153_v11 = vpop.permute.xlu1 %1152 }
 0x2be   : > { %v1157_v13 = vadd.f32 %v1153_v11, %v1139_v10 }
 0x2bf   : > { %v1123_v14 = vpop.permute.xlu0 %1122 }
 0x2c0   : > { %v1159_v15 = vpack.c.bf16 %v1157_v13, %v1156_v12  ;;  %v1128_v19 = vadd.f32 %v1123_v14, %v1108_v16  ;;  %v1629_v14 = vrot.slane %v1161_v50, %v1034_v48 }
 0x2c1   : > { %v1125_v18 = vpop.permute.xlu1 %1124 }
 0x2c2   : > { %v1129_v20 = vadd.f32 %v1125_v18, %v1109_v17  ;;  %1279 = vrot.lane.b32.xlu1 %v1159_v15, %s3231_s23  ;;  %1167 = vrot.lane.b32.xlu0 %v1159_v15, %s3228_s22  ;;  %v1631_v22 = vrot.slane %v1159_v15, 4 }
 0x2c4   : > { %v1158_v21 = vpack.c.bf16 %v1129_v20, %v1128_v19 }
 0x2c6   : > { %1396 = vrot.lane.b32.xlu1 %v1159_v15, %s3232_s16  ;;  %1277 = vrot.lane.b32.xlu0 %v1158_v21, %s3233_s19  ;;  %v1630_v23 = vrot.slane %v1158_v21, 4 }
 0x2ca   : > { %1512 = vrot.lane.b32.xlu1 %v1159_v15, %s3234_s17  ;;  %1394 = vrot.lane.b32.xlu0 %v1158_v21, %s3235_s2 }
 0x2ce   : > { %1632 = vrot.lane.b32.xlu1 %v1631_v22, %s3228_s22  ;;  %1510 = vrot.lane.b32.xlu0 %v1158_v21, %s3236_s1  ;;  %s3916_s22 = scalar_lea.vmem %s3855_s11, %s3391_s7 }
 0x2d2   : > { %1742 = vrot.lane.b32.xlu0 %v1631_v22, %s3231_s23  ;;  %1740 = vrot.lane.b32.xlu1 %v1630_v23, %s3233_s19  ;;  %s3239_s23 = smov 24  }
 0x2d6   : > { %1857 = vrot.lane.b32.xlu0 %v1631_v22, %s3232_s16  ;;  %1855 = vrot.lane.b32.xlu1 %v1630_v23, %s3235_s2 }
 0x2da   : > { %1972 = vrot.lane.b32.xlu0 %v1631_v22, %s3234_s17  ;;  %1970 = vrot.lane.b32.xlu1 %v1630_v23, %s3236_s1 }
 0x334   : > { %v1168_v24 = vpop.permute.xlu0 %1167  ;;  %v1280_v26 = vpop.permute.xlu1 %1279 }
 0x335   : > { %v1174_v25 = vsel %vm1169_vm4, %v1168_v24, 0  ;;  %v1285_v27 = vsel %vm1169_vm4, %v1280_v26, 0 }
 0x336   : > { %2941 = vmatpush3.bf16.xpose.msra.mxu1 %v1174_v25 }
 0x337   : > { %2952 = vmatprep.subr.bf16.mxu1 %v3229_v42 }
 0x338   : > { %v1397_v28 = vpop.permute.xlu1 %1396  ;;  %v1278_v29 = vpop.permute.xlu0 %1277 }
 0x339   : > { %v1402_v30 = vsel %vm1169_vm4, %v1397_v28, 0 }
 0x33c   : > { %v1513_v31 = vpop.permute.xlu1 %1512  ;;  %v1395_v32 = vpop.permute.xlu0 %1394 }
 0x33d   : > { %2943 = vmatmul.mubr.msk.bf16.vlgmr.msra.gmra.mrb[0].mxu1 %vm1169_vm4, %v1158_v21  ;;  %v1518_v33 = vsel %vm1169_vm4, %v1513_v31, 0 }
 0x33e   : > { %2953 = vmatpush3.bf16.xpose.msra.mxu1 %v1285_v27  ;;  %2954 = vmatprep.mubr.msk.bf16.mxu1 %vm3230_vm3, %v3229_v42 }
 0x33f   : > { %2964 = vmatprep.subr.bf16.mxu1 %v3229_v42 }
 0x340   : > { %v1633_v34 = vpop.permute.xlu1 %1632  ;;  %v1511_v35 = vpop.permute.xlu0 %1510 }
 0x341   : > { %v1638_v36 = vsel %vm1169_vm4, %v1633_v34, 0 }
 0x344   : > { %v1743_v37 = vpop.permute.xlu0 %1742  ;;  %v1741_v40 = vpop.permute.xlu1 %1740 }
 0x345   : > { %2955 = vmatmul.mubr.msk.bf16.vlgmr.msra.gmra.mrb[4].mxu1 %vm1169_vm4, %v1278_v29  ;;  %v1748_v38 = vsel %vm1169_vm4, %v1743_v37, 0 }
 0x346   : > { %2965 = vmatpush3.bf16.xpose.msra.mxu1 %v1402_v30  ;;  %2966 = vmatprep.mubr.msk.bf16.mxu1 %vm3230_vm3, %v3229_v42 }
 0x347   : > { %2976 = vmatprep.subr.bf16.mxu1 %v3229_v42 }
 0x348   : > { %v1858_v39 = vpop.permute.xlu0 %1857  ;;  %v1856_v46 = vpop.permute.xlu1 %1855 }
 0x349   : > { %v1863_v41 = vsel %vm1169_vm4, %v1858_v39, 0 }
 0x34c   : > { %v1973_v43 = vpop.permute.xlu0 %1972  ;;  %v1971_v49 = vpop.permute.xlu1 %1970 }
 0x34d   : > { %2967 = vmatmul.mubr.msk.bf16.vlgmr.msra.gmra.mrb[8].mxu1 %vm1169_vm4, %v1395_v32  ;;  %v1978_v47 = vsel %vm1169_vm4, %v1973_v43, 0 }
 0x34e   : > { %2977 = vmatpush3.bf16.xpose.msra.mxu1 %v1518_v33  ;;  %2978 = vmatprep.mubr.msk.bf16.mxu1 %vm3230_vm3, %v3229_v42 }
 0x34f   : > { %2988 = vmatprep.subr.bf16.mxu1 %v3229_v42 }
 0x355   : > { %2979 = vmatmul.mubr.msk.bf16.vlgmr.msra.gmra.mrb[12].mxu1 %vm1169_vm4, %v1511_v35 }
 0x356   : > { %2989 = vmatpush3.bf16.xpose.msra.mxu1 %v1638_v36  ;;  %2990 = vmatprep.mubr.msk.bf16.mxu1 %vm3230_vm3, %v3229_v42 }
 0x357   : > { %3000 = vmatprep.subr.bf16.mxu1 %v3229_v42 }
 0x35d   : > { %2991 = vmatmul.mubr.msk.bf16.vlgmr.msra.gmra.mrb[16].mxu1 %vm1169_vm4, %v1630_v23 }
 0x35e   : > { %3001 = vmatpush3.bf16.xpose.msra.mxu1 %v1748_v38  ;;  %3002 = vmatprep.mubr.msk.bf16.mxu1 %vm3230_vm3, %v3229_v42 }
 0x35f   : > { %3012 = vmatprep.subr.bf16.mxu1 %v3229_v42 }
 0x365   : > { %3003 = vmatmul.mubr.msk.bf16.vlgmr.msra.gmra.mrb[20].mxu1 %vm1169_vm4, %v1741_v40 }
 0x366   : > { %3013 = vmatpush3.bf16.xpose.msra.mxu1 %v1863_v41  ;;  %3014 = vmatprep.mubr.msk.bf16.mxu1 %vm3230_vm3, %v3229_v42 }
 0x367   : > { %3024 = vmatprep.subr.bf16.mxu1 %v3229_v42 }
 0x36d   : > { %3015 = vmatmul.mubr.msk.bf16.vlgmr.msra.gmra.mrb[24].mxu1 %vm1169_vm4, %v1856_v46 }
 0x36e   : > { %3025 = vmatpush3.bf16.xpose.msra.mxu1 %v1978_v47  ;;  %3026 = vmatprep.mubr.msk.bf16.mxu1 %vm3230_vm3, %v3229_v42 }
 0x36f   : > { %3036 = vmatprep.subr.bf16.mxu1 %v3229_v42 }
 0x375   : > { %3027 = vmatmul.mubr.msk.bf16.vlgmr.msra.gmra.mrb[28].mxu1 %vm1169_vm4, %v1971_v49 }
 0x376   : > { %3040 = vmatprep.mubr.msk.bf16.mxu1 %vm3230_vm3, %v3229_v42 }
 0x410   : > { %v1210_v52 = vpop.f32.mrb[0].mxu1 }
 0x411   : > { %v1211_v53 = vadd.f32 %v1210_v52, %v1165_v51  ;;  %v2944_v54 = vpop.f32.mrb[1].mxu1 }
 0x412   : > { %v1213_v55 = vpop.f32.mrb[2].mxu1 }
 0x413   : > { %v2945_v56 = vpop.f32.mrb[3].mxu1  ;;  %v1216_v57 = vsel %vm1169_vm4, %v1211_v53, -inf }
 0x414   : > { %1217 = vmax.xlane.f32.xlu0 %v1216_v57 }
 0x418   : > { %v1321_v58 = vpop.f32.mrb[4].mxu1 }
 0x419   : > { %v1322_v59 = vadd.f32 %v1321_v58, %v1165_v51  ;;  %v2956_v60 = vpop.f32.mrb[5].mxu1 }
 0x41a   : > { %v1324_v61 = vpop.f32.mrb[6].mxu1 }
 0x41b   : > { %v2957_v62 = vpop.f32.mrb[7].mxu1  ;;  %v1327_v0 = vsel %vm1169_vm4, %v1322_v59, -inf }
 0x41c   : > { %1328 = vmax.xlane.f32.xlu1 %v1327_v0 }
 0x420   : > { %v1438_v1 = vpop.f32.mrb[8].mxu1 }
 0x421   : > { %v1439_v4 = vadd.f32 %v1438_v1, %v1165_v51  ;;  %v2968_v5 = vpop.f32.mrb[9].mxu1 }
 0x422   : > { %v1441_v45 = vpop.f32.mrb[10].mxu1  ;;  %v3624_v5 = vrot.slane %v3522_v63, 4 }
 0x423   : > { %v2969_v6 = vpop.f32.mrb[11].mxu1  ;;  %v1444_v7 = vsel %vm1169_vm4, %v1439_v4, -inf }
 0x424   : > { %1445 = vmax.xlane.f32.xlu0 %v1444_v7 }
 0x428   : > { %v1554_v8 = vpop.f32.mrb[12].mxu1 }
 0x429   : > { %v1555_v9 = vadd.f32 %v1554_v8, %v1165_v51  ;;  %v2980_v10 = vpop.f32.mrb[13].mxu1 }
 0x42a   : > { %v1557_v11 = vpop.f32.mrb[14].mxu1 }
 0x42b   : > { %v2981_v12 = vpop.f32.mrb[15].mxu1  ;;  %v1560_v13 = vsel %vm1169_vm4, %v1555_v9, -inf }
 0x42c   : > { %1561 = vmax.xlane.f32.xlu0 %v1560_v13 }
 0x430   : > { %v1674_v15 = vpop.f32.mrb[16].mxu1 }
 0x431   : > { %v1675_v16 = vadd.f32 %v1674_v15, %v1629_v14  ;;  %v2992_v17 = vpop.f32.mrb[17].mxu1 }
 0x432   : > { %v1677_v18 = vpop.f32.mrb[18].mxu1 }
 0x433   : > { %v2993_v19 = vpop.f32.mrb[19].mxu1  ;;  %v1680_v20 = vsel %vm1169_vm4, %v1675_v16, -inf }
 0x434   : > { %1681 = vmax.xlane.f32.xlu0 %v1680_v20 }
 0x438   : > { %v1784_v21 = vpop.f32.mrb[20].mxu1 }
 0x439   : > { %v3596_v22 = vadd.f32 %v1784_v21, %v1629_v14  ;;  %v3004_v23 = vpop.f32.mrb[21].mxu1 }
 0x43a   : > { %v1787_v24 = vpop.f32.mrb[22].mxu1 }
 0x43b   : > { %v3005_v25 = vpop.f32.mrb[23].mxu1  ;;  %v1790_v26 = vsel %vm1169_vm4, %v3596_v22, -inf }
 0x43c   : > { %1791 = vmax.xlane.f32.xlu1 %v1790_v26 }
 0x440   : > { %v1899_v44 = vpop.f32.mrb[24].mxu1 }
 0x441   : > { %v1900_v48 = vadd.f32 %v1899_v44, %v1629_v14  ;;  %v3016_v27 = vpop.f32.mrb[25].mxu1 }
 0x442   : > { %v1902_v28 = vpop.f32.mrb[26].mxu1 }
 0x443   : > { %v3017_v29 = vpop.f32.mrb[27].mxu1  ;;  %v1905_v30 = vsel %vm1169_vm4, %v1900_v48, -inf }
 0x444   : > { %1906 = vmax.xlane.f32.xlu0 %v1905_v30 }
 0x448   : > { %v2014_v31 = vpop.f32.mrb[28].mxu1 }
 0x449   : > { %v2015_v32 = vadd.f32 %v2014_v31, %v1629_v14  ;;  %v3028_v33 = vpop.f32.mrb[29].mxu1 }
 0x44a   : > { %v2017_v34 = vpop.f32.mrb[30].mxu1 }
 0x44b   : > { %v3029_v35 = vpop.f32.mrb[31].mxu1  ;;  %v2020_v36 = vsel %vm1169_vm4, %v2015_v32, -inf }
 0x44c   : > { %2021 = vmax.xlane.f32.xlu1 %v2020_v36 }
 0x45a   : > { %1456 = vrot.lane.b32.xlu0 %v3522_v63, %s3235_s2 }
 0x45d   : > { %1340 = vrot.lane.b32.xlu1 %v3522_v63, %s3233_s19 }
 0x4a1   : > { %v1218_v37 = vpop.xlane.xlu0 %1217 }
 0x4a2   : > { %v1219_v38 = vsub.f32 %v1211_v53, %v1218_v37 }
 0x4a4   : > { %v1220_v39 = vmul.f32 1.442695, %v1219_v38 }
 0x4a6   : > { %3131 = vpow2.f32 %v1220_v39 }
 0x4a9   : > { %v1329_v40 = vpop.xlane.xlu1 %1328 }
 0x4aa   : > { %v1330_v41 = vsub.f32 %v1322_v59, %v1329_v40  ;;  %v1697_v40 = vsel %vm1231_vm2, %v3624_v5, 0 }
 0x4ac   : > { %v1331_v43 = vmul.f32 1.442695, %v1330_v41 }
 0x4ae   : > { %3133 = vpow2.f32 %v1331_v43 }
 0x4b0   : > { %v3132_v46 = vpop.eup %3131 }
 0x4b1   : > { %v1446_v47 = vpop.xlane.xlu0 %1445  ;;  %v1222_v49 = vsel %vm1169_vm4, %v3132_v46, 0.0 }
 0x4b2   : > { %v1447_v50 = vsub.f32 %v1439_v4, %v1446_v47  ;;  %1223 = vadd.xlane.f32.xlu0 %v1222_v49 }
 0x4b4   : > { %v1448_v51 = vmul.f32 1.442695, %v1447_v50 }
 0x4b6   : > { %3135 = vpow2.f32 %v1448_v51 }
 0x4b8   : > { %v3607_v52 = vpop.eup %3133 }
 0x4b9   : > { %v1562_v54 = vpop.xlane.xlu0 %1561  ;;  %v1333_v53 = vsel %vm1169_vm4, %v3607_v52, 0.0 }
 0x4ba   : > { %v1563_v55 = vsub.f32 %v1555_v9, %v1562_v54  ;;  %1334 = vadd.xlane.f32.xlu1 %v1333_v53 }
 0x4bc   : > { %v1564_v56 = vmul.f32 1.442695, %v1563_v55 }
 0x4be   : > { %3137 = vpow2.f32 %v1564_v56 }
 0x4c0   : > { %v3611_v57 = vpop.eup %3135 }
 0x4c1   : > { %v1682_v58 = vpop.xlane.xlu0 %1681  ;;  %v1450_v59 = vsel %vm1169_vm4, %v3611_v57, 0.0 }
 0x4c2   : > { %v1683_v60 = vsub.f32 %v1675_v16, %v1682_v58  ;;  %1451 = vadd.xlane.f32.xlu0 %v1450_v59 }
 0x4c4   : > { %v1684_v61 = vmul.f32 1.442695, %v1683_v60 }
 0x4c6   : > { %3139 = vpow2.f32 %v1684_v61 }
 0x4c8   : > { %v3615_v62 = vpop.eup %3137 }
 0x4c9   : > { %v1566_v0 = vsel %vm1169_vm4, %v3615_v62, 0.0  ;;  %v1792_v8 = vpop.xlane.xlu1 %1791 }
 0x4ca   : > { %1567 = vadd.xlane.f32.xlu1 %v1566_v0  ;;  %v1793_v9 = vsub.f32 %v3596_v22, %v1792_v8 }
 0x4cc   : > { %v1794_v11 = vmul.f32 1.442695, %v1793_v9 }
 0x4d0   : > { %v3619_v1 = vpop.eup %3139 }
 0x4d1   : > { %v1686_v4 = vsel %vm1169_vm4, %v3619_v1, 0.0  ;;  %v1907_v45 = vpop.xlane.xlu0 %1906 }
 0x4d2   : > { %1687 = vadd.xlane.f32.xlu0 %v1686_v4  ;;  %v1908_v6 = vsub.f32 %v1900_v48, %v1907_v45 }
 0x4d4   : > { %v1909_v7 = vmul.f32 1.442695, %v1908_v6 }
 0x4d5   : > { %v1457_v19 = vpop.permute.xlu0 %1456 }
 0x4d6   : > { %3141 = vpow2.f32 %v1909_v7  ;;  %v1462_v29 = vsel %vm1231_vm2, %v1457_v19, 0 }
 0x4d7   : > { %3143 = vpow2.f32 %v1794_v11 }
 0x4d9   : > { %v2022_v10 = vpop.xlane.xlu1 %2021 }
 0x4da   : > { %v2023_v12 = vsub.f32 %v2015_v32, %v2022_v10 }
 0x4db   : > { %1802 = vrot.lane.b32.xlu1 %v3624_v5, %s3233_s19  ;;  %s3924_s19 = sld [smem:[#allocation25_spill]] (!%p2869_p5) }
 0x4dc   : > { %v2024_v13 = vmul.f32 1.442695, %v2023_v12 }
 0x4dd   : > { %v1341_v21 = vpop.permute.xlu1 %1340 }
 0x4de   : > { %3145 = vpow2.f32 %v2024_v13  ;;  %v1346_v26 = vsel %vm1231_vm2, %v1341_v21, 0 }
 0x4e0   : > { %v3631_v14 = vpop.eup %3141 }
 0x4e1   : > { %v1911_v15 = vsel %vm1169_vm4, %v3631_v14, 0.0  ;;  %v3635_v16 = vpop.eup %3143 }
 0x4e8   : > { %1572 = vrot.lane.b32.xlu0 %v3522_v63, %s3236_s1  ;;  %v1796_v63 = vsel %vm1169_vm4, %v3635_v16, 0.0  ;;  %v3639_v17 = vpop.eup %3145 }
 0x4e9   : > { %v2026_v18 = vsel %vm1169_vm4, %v3639_v17, 0.0 }
 0x4ff   : > { %1912 = vadd.xlane.f32.xlu1 %v1911_v15 }
 0x507   : > { %1797 = vadd.xlane.f32.xlu0 %v1796_v63 }
 0x50b   : > { %2027 = vadd.xlane.f32.xlu0 %v2026_v18 }
 0x510   : > { %2032 = vrot.lane.b32.xlu1 %v3624_v5, %s3236_s1 }
 0x521   : > { %1917 = vrot.lane.b32.xlu0 %v3624_v5, %s3235_s2  ;;  %s3925_s2 = sld [smem:[#allocation27_spill]] (!%p2869_p5) }
 0x53f   : > { %v1224_v20 = vpop.xlane.xlu0 %1223 }
 0x540   : > { %3147 = vrcp.f32 %v1224_v20 }
 0x547   : > { %v1335_v22 = vpop.xlane.xlu1 %1334 }
 0x548   : > { %3149 = vrcp.f32 %v1335_v22 }
 0x54a   : > { %v3148_v23 = vpop.eup %3147 }
 0x54b   : > { %v1226_v24 = vmul.f32 %v3148_v23, %v3132_v46 }
 0x54d   : > { %v1227_v25 = vpack.c.bf16 %v1226_v24, %v1226_v24 }
 0x54f   : > { %2949 = vmatmul.mubr.msk.bf16.vlgmr.msra.gmra.mrb[4].mxu0 %vm1169_vm4, %v1227_v25  ;;  %v1452_v44 = vpop.xlane.xlu0 %1451 }
 0x550   : > { %2959 = vmatpush3.bf16.msra.mxu0 %v1346_v26  ;;  %3151 = vrcp.f32 %v1452_v44  ;;  %2960 = vmatprep.mubr.msk.bf16.mxu0 %vm3230_vm3, %v3229_v42  ;;  %v3119_v44 = vld [vmem:[%s3421_s30] sm:$0xff]  }
 0x551   : > { %2970 = vmatprep.subr.bf16.mxu0 %v3229_v42  ;;  %3037 = vmatpush3.bf16.msra.mxu1 %v3119_v44  ;;  %v2859_v44 = vld [vmem:[%s949_s4] ss:$0 sm:$0xff] }
 0x552   : > { %v3150_v48 = vpop.eup %3149  ;;  %3038 = vmatprep.subr.bf16.mxu1 %v3229_v42 }
 0x553   : > { %v1337_v27 = vmul.f32 %v3150_v48, %v3607_v52  ;;  %v3120_v48 = vld [vmem:[%s3421_s30 + $0x8] sm:$0xff]   ;;  %s3917_s30 = sld [smem:[#allocation19_spill]] (!%p2869_p5) }
 0x555   : > { %v1338_v28 = vpack.c.bf16 %v1337_v27, %v1337_v27  ;;  %3039 = vmatpush3.bf16.msra.mxu1 %v3120_v48 }
 0x556   : > { %3052 = vmatprep.subr.bf16.mxu1 %v3229_v42 }
 0x557   : > { %v1568_v30 = vpop.xlane.xlu1 %1567  ;;  %2961 = vmatmul.mubr.msk.bf16.vlgmr.msra.gmra.mrb[8].mxu0 %vm1169_vm4, %v1338_v28 }
 0x558   : > { %3153 = vrcp.f32 %v1568_v30  ;;  %2971 = vmatpush3.bf16.msra.mxu0 %v1462_v29  ;;  %2972 = vmatprep.mubr.msk.bf16.mxu0 %vm3230_vm3, %v3229_v42 }
 0x559   : > { %2982 = vmatprep.subr.bf16.mxu0 %v3229_v42 }
 0x55a   : > { %v3152_v31 = vpop.eup %3151 }
 0x55b   : > { %v1454_v32 = vmul.f32 %v3152_v31, %v3611_v57  ;;  %v1803_v46 = vpop.permute.xlu1 %1802 }
 0x55c   : > { %v1808_v49 = vsel %vm1231_vm2, %v1803_v46, 0 }
 0x55d   : > { %v1455_v33 = vpack.c.bf16 %v1454_v32, %v1454_v32 }
 0x55f   : > { %2973 = vmatmul.mubr.msk.bf16.vlgmr.msra.gmra.mrb[12].mxu0 %vm1169_vm4, %v1455_v33  ;;  %v1688_v34 = vpop.xlane.xlu0 %1687 }
 0x560   : > { %3155 = vrcp.f32 %v1688_v34  ;;  %2984 = vmatprep.mubr.msk.bf16.mxu0 %vm3230_vm3, %v3229_v42 }
 0x562   : > { %v3154_v35 = vpop.eup %3153 }
 0x563   : > { %v1570_v36 = vmul.f32 %v3154_v35, %v3615_v62  ;;  %v1573_v37 = vpop.permute.xlu0 %1572 }
 0x564   : > { %v1578_v38 = vsel %vm1231_vm2, %v1573_v37, 0 }
 0x565   : > { %2983 = vmatpush3.bf16.msra.mxu0 %v1578_v38  ;;  %v1571_v39 = vpack.c.bf16 %v1570_v36, %v1570_v36 }
 0x566   : > { %2994 = vmatprep.subr.bf16.mxu0 %v3229_v42 }
 0x568   : > { %2985 = vmatmul.mubr.msk.bf16.vlgmr.msra.gmra.mrb[16].mxu0 %vm1169_vm4, %v1571_v39 }
 0x569   : > { %2995 = vmatpush3.bf16.msra.mxu0 %v1697_v40  ;;  %2996 = vmatprep.mubr.msk.bf16.mxu0 %vm3230_vm3, %v3229_v42 }
 0x56a   : > { %v3156_v41 = vpop.eup %3155  ;;  %3006 = vmatprep.subr.bf16.mxu0 %v3229_v42 }
 0x56b   : > { %v1690_v43 = vmul.f32 %v3156_v41, %v3619_v1 }
 0x56d   : > { %v1691_v47 = vpack.c.bf16 %v1690_v43, %v1690_v43 }
 0x570   : > { %2997 = vmatmul.mubr.msk.bf16.vlgmr.msra.gmra.mrb[20].mxu0 %vm1169_vm4, %v1691_v47  ;;  %v2853_v47 = vld [vmem:[%s935_s29] ss:$0 sm:$0xff]  ;;  %s3918_s29 = sld [smem:[#allocation20_spill]] (!%p2869_p5) }
 0x571   : > { %3007 = vmatpush3.bf16.msra.mxu0 %v1808_v49  ;;  %3008 = vmatprep.mubr.msk.bf16.mxu0 %vm3230_vm3, %v3229_v42 }
 0x572   : > { %3018 = vmatprep.subr.bf16.mxu0 %v3229_v42 }
 0x58c   : > { %v1913_v51 = vpop.xlane.xlu1 %1912 }
 0x590   : > { %v2033_v60 = vpop.permute.xlu1 %2032 }
 0x591   : > { %v2038_v0 = vsel %vm1231_vm2, %v2033_v60, 0 }
 0x594   : > { %v1798_v50 = vpop.xlane.xlu0 %1797 }
 0x595   : > { %3157 = vrcp.f32 %v1798_v50 }
 0x596   : > { %3159 = vrcp.f32 %v1913_v51 }
 0x598   : > { %v2028_v52 = vpop.xlane.xlu0 %2027 }
 0x599   : > { %3161 = vrcp.f32 %v2028_v52 }
 0x59c   : > { %v1918_v55 = vpop.permute.xlu0 %1917 }
 0x59d   : > { %v1923_v58 = vsel %vm1231_vm2, %v1918_v55, 0 }
 0x59f   : > { %v3158_v54 = vpop.eup %3157 }
 0x5a0   : > { %v1800_v53 = vmul.f32 %v3158_v54, %v3635_v16  ;;  %v3160_v57 = vpop.eup %3159 }
 0x5a1   : > { %v1915_v59 = vmul.f32 %v3160_v57, %v3631_v14 }
 0x5a2   : > { %v1801_v56 = vpack.c.bf16 %v1800_v53, %v1800_v53 }
 0x5a3   : > { %v1916_v61 = vpack.c.bf16 %v1915_v59, %v1915_v59  ;;  %v3162_v62 = vpop.eup %3161 }
 0x5a4   : > { %3009 = vmatmul.mubr.msk.bf16.vlgmr.msra.gmra.mrb[24].mxu0 %vm1169_vm4, %v1801_v56  ;;  %v2030_v1 = vmul.f32 %v3162_v62, %v3639_v17 }
 0x5a5   : > { %3019 = vmatpush3.bf16.msra.mxu0 %v1923_v58  ;;  %3020 = vmatprep.mubr.msk.bf16.mxu0 %vm3230_vm3, %v3229_v42 }
 0x5a6   : > { %3030 = vmatprep.subr.bf16.mxu0 %v3229_v42  ;;  %v2031_v4 = vpack.c.bf16 %v2030_v1, %v2030_v1 }
 0x5ac   : > { %3021 = vmatmul.mubr.msk.bf16.vlgmr.msra.gmra.mrb[28].mxu0 %vm1169_vm4, %v1916_v61 }
 0x5ad   : > { %3031 = vmatpush3.bf16.msra.mxu0 %v2038_v0  ;;  %3032 = vmatprep.mubr.msk.bf16.mxu0 %vm3230_vm3, %v3229_v42 }
 0x5ae   : > { %3044 = vmatprep.subr.bf16.mxu0 %v3229_v42 }
 0x5b4   : > { %3033 = vmatmul.mubr.msk.bf16.vlgmr.msra.gmra.mrb[32].mxu0 %vm1169_vm4, %v2031_v4 }
 0x5b5   : > { %3048 = vmatprep.mubr.msk.bf16.mxu0 %vm3230_vm3, %v3229_v42 }
 0x622   : > { %v1269_v5 = vpop.f32.mrb[4].mxu0 }
 0x623   : > { %1275 = vst.msk [vmem:[#allocation3] sm:$0xff] %vm1169_vm4, %v1269_v5  ;;  %v2950_v45 = vpop.f32.mrb[5].mxu0 }
 0x624   : > { %v1272_v6 = vpop.f32.mrb[6].mxu0  ;;  %v3121_v45 = vld [vmem:[%s3434_s8] sm:$0xff]  }
 0x625   : > { %v2951_v7 = vpop.f32.mrb[7].mxu0  ;;  %3045 = vmatpush3.bf16.msra.mxu0 %v3121_v45  ;;  %v3122_v6 = vld [vmem:[%s3434_s8 + $0x8] sm:$0xff]   ;;  %s3919_s8 = sld [smem:[#allocation21_spill]] (!%p2869_p5) }
 0x626   : > { %3046 = vmatprep.subr.bf16.mxu0 %v3229_v42  ;;  %v3172_v45 = vld [vmem:[%s3862_s18 + $0x8] sm:$0xff] (!%p2869_p5)  }
 0x629   : > { %3047 = vmatpush3.bf16.msra.mxu0 %v3122_v6 }
 0x62a   : > { %v1382_v8 = vpop.f32.mrb[8].mxu0 }
 0x62b   : > { %1389 = vrot.lane.b32.xlu1 %v1382_v8, %s3237_s5  ;;  %v2962_v9 = vpop.f32.mrb[9].mxu0 }
 0x62c   : > { %v1385_v10 = vpop.f32.mrb[10].mxu0 }
 0x62d   : > { %v2963_v11 = vpop.f32.mrb[11].mxu0 }
 0x632   : > { %v1498_v12 = vpop.f32.mrb[12].mxu0 }
 0x633   : > { %1505 = vrot.lane.b32.xlu1 %v1498_v12, %s3238_s21  ;;  %v2974_v13 = vpop.f32.mrb[13].mxu0 }
 0x634   : > { %v1501_v14 = vpop.f32.mrb[14].mxu0 }
 0x635   : > { %v2975_v15 = vpop.f32.mrb[15].mxu0 }
 0x636   : > { %v2857_v15 = vld [vmem:[%s938_s27] ss:$0 sm:$0xff]  ;;  %s3920_s27 = sld [smem:[#allocation24_spill]] (!%p2869_p5) }
 0x63b   : > { %v1614_v16 = vpop.f32.mrb[16].mxu0 }
 0x63c   : > { %1621 = vrot.lane.b32.xlu0 %v1614_v16, %s3239_s23  ;;  %v2986_v63 = vpop.f32.mrb[17].mxu0  ;;  %s3921_s26 = smov (!%p2869_p5), %s3920_s27 }
 0x63d   : > { %v1617_v17 = vpop.f32.mrb[18].mxu0 }
 0x63e   : > { %v2987_v18 = vpop.f32.mrb[19].mxu0 }
 0x63f   : > { %v2858_v18 = vld [vmem:[%s3916_s22] ss:$0 sm:$0xff] }
 0x643   : > { %v1733_v19 = vpop.f32.mrb[20].mxu0 }
 0x644   : > { %1739 = vst.msk [vmem:[#allocation3 + $0x8] sm:$0xff] %vm1169_vm4, %v1733_v19  ;;  %v2998_v20 = vpop.f32.mrb[21].mxu0 }
 0x645   : > { %v1736_v21 = vpop.f32.mrb[22].mxu0 }
 0x646   : > { %v2999_v22 = vpop.f32.mrb[23].mxu0 }
 0x677   : > { %v1844_v23 = vpop.f32.mrb[24].mxu0 }
 0x678   : > { %1851 = vrot.lane.b32.xlu1 %v1844_v23, %s3237_s5  ;;  %v3010_v24 = vpop.f32.mrb[25].mxu0  ;;  %v3123_v23 = vld [vmem:[%s3443_s9] sm:$0xff]  }
 0x679   : > { %v1847_v25 = vpop.f32.mrb[26].mxu0  ;;  %v3124_v24 = vld [vmem:[%s3443_s9 + $0x8] sm:$0xff]  }
 0x67a   : > { %v3011_v26 = vpop.f32.mrb[27].mxu0  ;;  %v3125_v25 = vld [vmem:[%s3443_s9 + $0x10] sm:$0xff]  }
 0x67b   : > { %v3126_v26 = vld [vmem:[%s3443_s9 + $0x18] sm:$0xff]  }
 0x67f   : > { %v1959_v27 = vpop.f32.mrb[28].mxu0 }
 0x680   : > { %1966 = vrot.lane.b32.xlu1 %v1959_v27, %s3238_s21  ;;  %v3022_v28 = vpop.f32.mrb[29].mxu0 }
 0x681   : > { %v1962_v29 = vpop.f32.mrb[30].mxu0 }
 0x682   : > { %v3023_v30 = vpop.f32.mrb[31].mxu0 }
 0x687   : > { %v2074_v31 = vpop.f32.mrb[32].mxu0 }
 0x688   : > { %2081 = vrot.lane.b32.xlu1 %v2074_v31, %s3239_s23  ;;  %v3034_v32 = vpop.f32.mrb[33].mxu0  ;;  %s3923_s23 = sld [smem:[#allocation23_spill]] (!%p2869_p5) }
 0x689   : > { %v2077_v33 = vpop.f32.mrb[34].mxu0 }
 0x68a   : > { %v3035_v34 = vpop.f32.mrb[35].mxu0 }
 0x69d   : > { %v1390_v35 = vpop.permute.xlu1 %1389 }
 0x69e   : > { %1393 = vst.msk [vmem:[#allocation3] sm:$0xff] %vm1392_vm5, %v1390_v35 }
 0x6a5   : > { %v1506_v36 = vpop.permute.xlu1 %1505 }
 0x6a6   : > { %1509 = vst.msk [vmem:[#allocation3] sm:$0xff] %vm1508_vm6, %v1506_v36 }
 0x6ae   : > { %v1622_v37 = vpop.permute.xlu0 %1621 }
 0x6af   : > { %1625 = vst.msk [vmem:[#allocation3] sm:$0xff] %vm1624_vm7, %v1622_v37 }
 0x6b6   : > { %v2085_v41 = vld [vmem:[#allocation3] sm:$0xff] }
 0x6ea   : > { %v1852_v38 = vpop.permute.xlu1 %1851 }
 0x6eb   : > { %1854 = vst.msk [vmem:[#allocation3 + $0x8] sm:$0xff] %vm1392_vm5, %v1852_v38 }
 0x6f2   : > { %v1967_v39 = vpop.permute.xlu1 %1966 }
 0x6f3   : > { %1969 = vst.msk [vmem:[#allocation3 + $0x8] sm:$0xff] %vm1508_vm6, %v1967_v39 }
 0x6fa   : > { %v2082_v40 = vpop.permute.xlu1 %2081 }
 0x6fb   : > { %2084 = vst.msk [vmem:[#allocation3 + $0x8] sm:$0xff] %vm1624_vm7, %v2082_v40 }
 0x702   : > { %v2086_v43 = vld [vmem:[#allocation3 + $0x8] sm:$0xff] }
 0x703   : > { %v2087_v46 = vpack.c.bf16 %v2086_v43, %v2085_v41 }
 0x705   : > { %3041 = vmatmul.mubr.msk.bf16.vlgmr.msra.gmra.mrb[32].mxu1 %vm977_vm1, %v2087_v46  ;;  %v2868_v46 = vld [vmem:[%s957_s6] ss:$0 sm:$0xff]  ;;  %s3922_s6 = sld [smem:[#allocation22_spill]] (!%p2869_p5) }
 0x706   : > { %3060 = vmatprep.mubr.msk.bf16.mxu1 %vm3230_vm3, %v3229_v42  ;;  %3053 = vmatpush3.bf16.msra.mxu1 %v3123_v23 }
 0x707   : > { %3054 = vmatprep.subr.bf16.mxu1 %v3229_v42 }
 0x70a   : > { %3055 = vmatpush3.bf16.msra.mxu1 %v3124_v24 }
 0x70b   : > { %3056 = vmatprep.subr.bf16.mxu1 %v3229_v42 }
 0x70e   : > { %3057 = vmatpush3.bf16.msra.mxu1 %v3125_v25 }
 0x70f   : > { %3058 = vmatprep.subr.bf16.mxu1 %v3229_v42 }
 0x712   : > { %3059 = vmatpush3.bf16.msra.mxu1 %v3126_v26 }
 0x7d8   : > { %v2148_v49 = vpop.f32.mrb[32].mxu1 }
 0x7d9   : > { %v2149_v50 = vadd.f32 %v2853_v47, %v2148_v49  ;;  %v3042_v51 = vpop.f32.mrb[33].mxu1 }
 0x7da   : > { %v2151_v52 = vpop.f32.mrb[34].mxu1 }
 0x7db   : > { %v3710_v54 = vadd.f32 %v2149_v50, %v3461_v2  ;;  %v2152_v53 = vadd.f32 %v2853_v47, %v2151_v52  ;;  %v3043_v55 = vpop.f32.mrb[35].mxu1 }
 0x7dd   : > { %v3713_v56 = vadd.f32 %v2152_v53, %v3463_v3  ;;  %v2159_v57 = vsel %vm977_vm1, %v3710_v54, 0.0 }
 0x7de   : > { %2160 = vadd.xlane.f32.xlu0 %v2159_v57 }
 0x7df   : > { %v2162_v58 = vsel %vm977_vm1, %v3713_v56, 0.0 }
 0x7e0   : > { %2163 = vadd.xlane.f32.xlu1 %v2162_v58 }
 0x86b   : > { %v2161_v59 = vpop.xlane.xlu0 %2160 }
 0x86c   : > { %v2165_v60 = vmul.f32 0.03125, %v2161_v59 }
 0x86d   : > { %v2164_v61 = vpop.xlane.xlu1 %2163 }
 0x86e   : > { %v2167_v2 = vsub.f32 %v3710_v54, %v2165_v60  ;;  %v2166_v62 = vmul.f32 0.03125, %v2164_v61 }
 0x870   : > { %v2168_v0 = vsub.f32 %v3713_v56, %v2166_v62  ;;  %v2169_v3 = vmul.f32 %v2167_v2, %v2167_v2 }
 0x872   : > { %v2171_v1 = vsel %vm977_vm1, %v2169_v3, 0.0  ;;  %v2170_v4 = vmul.f32 %v2168_v0, %v2168_v0 }
 0x873   : > { %2172 = vadd.xlane.f32.xlu0 %v2171_v1 }
 0x874   : > { %v2174_v5 = vsel %vm977_vm1, %v2170_v4, 0.0  ;;  %v3171_v4 = vld [vmem:[%s3862_s18] sm:$0xff] (!%p2869_p5)  }
 0x877   : > { %2175 = vadd.xlane.f32.xlu0 %v2174_v5  ;;  %v3240_v5 = vmov (!%p2869_p5), 0.0  }
 0x878   : > { %3064 = vmatprep.subr.bf16.mxu0 (!%p2869_p5), %v3240_v5  ;;  %3072 = vmatprep.subr.bf16.mxu1 (!%p2869_p5), %v3240_v5 }
 0x900   : > { %v2173_v7 = vpop.xlane.xlu0 %2172 }
 0x901   : > { %v2177_v8 = vmul.f32 0.03125, %v2173_v7 }
 0x903   : > { %v2179_v9 = vadd.f32 1e-05, %v2177_v8 }
 0x904   : > { %v2176_v10 = vpop.xlane.xlu0 %2175 }
 0x905   : > { %3163 = vrsqrt.f32 %v2179_v9  ;;  %v2178_v11 = vmul.f32 0.03125, %v2176_v10 }
 0x907   : > { %v2180_v12 = vadd.f32 1e-05, %v2178_v11 }
 0x909   : > { %3165 = vrsqrt.f32 %v2180_v12 }
 0x90f   : > { %v3164_v13 = vpop.eup %3163 }
 0x910   : > { %v2183_v14 = vmul.f32 %v3164_v13, %v2167_v2  ;;  %v2870_v13 = vld [vmem:[%s3917_s30] ss:$0 sm:$0xff] (!%p2869_p5) }
 0x912   : > { %v2191_v63 = vmul.f32 %v2857_v15, %v2183_v14 }
 0x913   : > { %v3166_v16 = vpop.eup %3165 }
 0x914   : > { %v2184_v17 = vmul.f32 %v3166_v16, %v2168_v0  ;;  %v2199_v20 = vadd.f32 %v2858_v18, %v2191_v63 }
 0x916   : > { %v2192_v19 = vmul.f32 %v2857_v15, %v2184_v17  ;;  %v2871_v15 = vld [vmem:[%s3918_s29] ss:$0 sm:$0xff] (!%p2869_p5) }
 0x918   : > { %v2200_v21 = vadd.f32 %v2858_v18, %v2192_v19 }
 0x91a   : > { %v2201_v22 = vpack.c.bf16 %v2200_v21, %v2199_v20 }
 0x91c   : > { %3049 = vmatmul.mubr.msk.bf16.vlgmr.msra.gmra.mrb[36].mxu0 %vm977_vm1, %v2201_v22  ;;  %v2872_v22 = vld [vmem:[%s3919_s8] ss:$0 sm:$0xff] (!%p2869_p5) }
 0x91d   : > { %3068 = vmatprep.mubr.msk.bf16.mxu0 (!%p2869_p5), %vm3241_vm9, %v3240_v5  ;;  %3065 = vmatpush3.bf16.msra.mxu0 (!%p2869_p5), %v3171_v4 }
 0x91e   : > { %3066 = vmatprep.subr.bf16.mxu0 (!%p2869_p5), %v3240_v5 }
 0x921   : > { %3067 = vmatpush3.bf16.msra.mxu0 (!%p2869_p5), %v3172_v45 }
 0x9ef   : > { %v2262_v48 = vpop.f32.mrb[36].mxu0 }
 0x9f0   : > { %v2263_v27 = vadd.f32 %v2859_v44, %v2262_v48  ;;  %v3050_v28 = vpop.f32.mrb[37].mxu0 }
 0x9f1   : > { %v2265_v29 = vpop.f32.mrb[38].mxu0 }
 0x9f2   : > { %v2272_v30 = vmul.f32 0.70710677, %v2263_v27  ;;  %v2266_v31 = vadd.f32 %v2859_v44, %v2265_v29  ;;  %v3051_v32 = vpop.f32.mrb[39].mxu0  ;;  %v2269_v36 = vmul.f32 0.5, %v2263_v27 }
 0x9f4   : > { %3167 = verf.f32 %v2272_v30  ;;  %v2273_v33 = vmul.f32 0.70710677, %v2266_v31  ;;  %v2270_v37 = vmul.f32 0.5, %v2266_v31 }
 0x9f6   : > { %3169 = verf.f32 %v2273_v33 }
 0x9fe   : > { %v3168_v34 = vpop.eup %3167 }
 0x9ff   : > { %v2276_v42 = vadd.f32 1.0, %v3168_v34 }
 0xa00   : > { %v3170_v35 = vpop.eup %3169 }
 0xa01   : > { %v2277_v38 = vadd.f32 1.0, %v3170_v35  ;;  %v2278_v39 = vmul.f32 %v2276_v42, %v2269_v36 }
 0xa03   : > { %v2279_v40 = vmul.f32 %v2277_v38, %v2270_v37 }
 0xa05   : > { %v2280_v41 = vpack.c.bf16 %v2279_v40, %v2278_v39 }
 0xa07   : > { %3061 = vmatmul.mubr.msk.bf16.vlgmr.msra.gmra.mrb[36].mxu1 %vm2313_vm8, %v2280_v41 }
 0xa08   : > { %3076 = vmatprep.mubr.msk.bf16.mxu1 (!%p2869_p5), %vm3241_vm9, %v3240_v5 }
 0xada   : > { %v2351_v43 = vpop.f32.mrb[36].mxu1 }
 0xadb   : > { %v2358_v47 = vadd.f32 %v2351_v43, %v3710_v54  ;;  %v3062_v49 = vpop.f32.mrb[37].mxu1  ;;  %2376 = sbr.rel (%p2869_p5) target bundleno = 3867 (0xf1b), region = 124 }
 0xadc   : > { %v2354_v50 = vpop.f32.mrb[38].mxu1 }
 0xadd   : > { %v2367_v51 = vadd.f32 %v2868_v46, %v2358_v47  ;;  %v2359_v52 = vadd.f32 %v2354_v50, %v3713_v56  ;;  %v3063_v53 = vpop.f32.mrb[39].mxu1 }
 0xade   : > { %v3174_v53 = vld [vmem:[%s3921_s26 + $0x8] sm:$0xff] (!%p2869_p5)  }
 0xadf   : > { %2369 = vst.msk [vmem:[#allocation2] sm:$0xff] %vm977_vm1, %v2367_v51  ;;  %2371 = vst.msk [vmem:[%s3452_s25] sm:$0xff] %vm977_vm1, %v2367_v51  ;;  %v2368_v55 = vadd.f32 %v2868_v46, %v2359_v52  ;;  %v2379_v54 = vsel (!%p2869_p5), %vm977_vm1, %v2367_v51, 0.0  ;;  %v3173_v52 = vld [vmem:[%s3920_s27] sm:$0xff] (!%p2869_p5)  }
 0xae0   : > { %2380 = vadd.xlane.f32.xlu0 (!%p2869_p5), %v2379_v54  ;;  %3073 = vmatpush3.bf16.msra.mxu1 (!%p2869_p5), %v3173_v52 }
 0xae1   : > { %2370 = vst.msk [vmem:[#allocation2 + $0x8] sm:$0xff] %vm977_vm1, %v2368_v55  ;;  %2372 = vst.msk [vmem:[%s3452_s25 + $0x8] sm:$0xff] %vm977_vm1, %v2368_v55  ;;  %v2382_v57 = vsel (!%p2869_p5), %vm977_vm1, %v2368_v55, 0.0  ;;  %3074 = vmatprep.subr.bf16.mxu1 (!%p2869_p5), %v3240_v5 }
 0xae4   : > { %2383 = vadd.xlane.f32.xlu0 %v2382_v57  ;;  %3075 = vmatpush3.bf16.msra.mxu1 %v3174_v53 }
 0xb6d   : > { %v2381_v56 = vpop.xlane.xlu0 %2380 }
 0xb6e   : > { %v2385_v58 = vmul.f32 0.03125, %v2381_v56 }
 0xb70   : > { %v2387_v59 = vsub.f32 %v2367_v51, %v2385_v58 }
 0xb71   : > { %v2384_v60 = vpop.xlane.xlu0 %2383 }
 0xb72   : > { %v2386_v61 = vmul.f32 0.03125, %v2384_v60  ;;  %v2389_v2 = vmul.f32 %v2387_v59, %v2387_v59 }
 0xb74   : > { %v2388_v62 = vsub.f32 %v2368_v55, %v2386_v61  ;;  %v2391_v0 = vsel %vm977_vm1, %v2389_v2, 0.0  ;;  %v2876_v61 = vld [vmem:[%s3922_s6] ss:$0 sm:$0xff] }
 0xb75   : > { %2392 = vadd.xlane.f32.xlu1 %v2391_v0 }
 0xb76   : > { %v2390_v3 = vmul.f32 %v2388_v62, %v2388_v62 }
 0xb78   : > { %v2394_v1 = vsel %vm977_vm1, %v2390_v3, 0.0 }
 0xb79   : > { %2395 = vadd.xlane.f32.xlu1 %v2394_v1  ;;  %v2877_v1 = vld [vmem:[%s3923_s23] ss:$0 sm:$0xff] }
 0xc02   : > { %v2393_v6 = vpop.xlane.xlu1 %2392 }
 0xc03   : > { %v2397_v7 = vmul.f32 0.03125, %v2393_v6 }
 0xc05   : > { %v2399_v8 = vadd.f32 1e-05, %v2397_v7  ;;  %v2878_v7 = vld [vmem:[%s3924_s19] ss:$0 sm:$0xff] }
 0xc06   : > { %v2396_v9 = vpop.xlane.xlu1 %2395 }
 0xc07   : > { %3175 = vrsqrt.f32 %v2399_v8  ;;  %v2398_v10 = vmul.f32 0.03125, %v2396_v9 }
 0xc09   : > { %v2400_v11 = vadd.f32 1e-05, %v2398_v10 }
 0xc0b   : > { %3177 = vrsqrt.f32 %v2400_v11 }
 0xc11   : > { %v3176_v12 = vpop.eup %3175 }
 0xc12   : > { %v2403_v14 = vmul.f32 %v3176_v12, %v2387_v59 }
 0xc14   : > { %v2411_v16 = vmul.f32 %v2870_v13, %v2403_v14 }
 0xc15   : > { %v3178_v63 = vpop.eup %3177 }
 0xc16   : > { %v2404_v17 = vmul.f32 %v3178_v63, %v2388_v62  ;;  %v2419_v18 = vadd.f32 %v2871_v15, %v2411_v16 }
 0xc18   : > { %v2412_v19 = vmul.f32 %v2870_v13, %v2404_v17  ;;  %2421 = vst.msk [vmem:[#allocation4] sm:$0xff] %vm977_vm1, %v2419_v18 }
 0xc1a   : > { %v2420_v20 = vadd.f32 %v2871_v15, %v2412_v19 }
 0xc1c   : > { %2422 = vst.msk [vmem:[#allocation4 + $0x8] sm:$0xff] %vm977_vm1, %v2420_v20  ;;  %v2423_v21 = vpack.c.bf16 %v2420_v20, %v2419_v18 }
 0xc1e   : > { %3069 = vmatmul.mubr.msk.bf16.vlgmr.msra.gmra.mrb[0].mxu0 %vm977_vm1, %v2423_v21 }
 0xcf1   : > { %v2484_v23 = vpop.f32.mrb[0].mxu0 }
 0xcf2   : > { %v2485_v24 = vadd.f32 %v2872_v22, %v2484_v23  ;;  %v3070_v25 = vpop.f32.mrb[1].mxu0 }
 0xcf3   : > { %v2487_v26 = vpop.f32.mrb[2].mxu0 }
 0xcf4   : > { %v2493_v44 = vmul.f32 0.70710677, %v2485_v24  ;;  %v2488_v48 = vadd.f32 %v2872_v22, %v2487_v26  ;;  %v3071_v27 = vpop.f32.mrb[3].mxu0  ;;  %v2491_v30 = vmul.f32 0.5, %v2485_v24 }
 0xcf6   : > { %3179 = verf.f32 %v2493_v44  ;;  %v2494_v28 = vmul.f32 0.70710677, %v2488_v48  ;;  %v2492_v33 = vmul.f32 0.5, %v2488_v48 }
 0xcf8   : > { %3181 = verf.f32 %v2494_v28 }
 0xd00   : > { %v3180_v29 = vpop.eup %3179 }
 0xd01   : > { %v2497_v31 = vadd.f32 1.0, %v3180_v29 }
 0xd02   : > { %v3182_v32 = vpop.eup %3181 }
 0xd03   : > { %v2499_v34 = vmul.f32 %v2497_v31, %v2491_v30  ;;  %v2498_v42 = vadd.f32 1.0, %v3182_v32 }
 0xd05   : > { %v2503_v35 = vsel %vm977_vm1, %v2499_v34, 0.0  ;;  %v2500_v36 = vmul.f32 %v2498_v42, %v2492_v33 }
 0xd06   : > { %2504 = vadd.xlane.f32.xlu0 %v2503_v35 }
 0xd07   : > { %v2506_v37 = vsel %vm977_vm1, %v2500_v36, 0.0 }
 0xd08   : > { %2507 = vadd.xlane.f32.xlu1 %v2506_v37 }
 0xd93   : > { %v2505_v38 = vpop.xlane.xlu0 %2504 }
 0xd94   : > { %v2509_v39 = vmul.f32 0.03125, %v2505_v38 }
 0xd95   : > { %v2508_v40 = vpop.xlane.xlu1 %2507 }
 0xd96   : > { %v2511_v41 = vsub.f32 %v2499_v34, %v2509_v39  ;;  %v2510_v43 = vmul.f32 0.03125, %v2508_v40 }
 0xd98   : > { %v2512_v46 = vsub.f32 %v2500_v36, %v2510_v43  ;;  %v2513_v47 = vmul.f32 %v2511_v41, %v2511_v41 }
 0xd9a   : > { %v2515_v49 = vsel %vm977_vm1, %v2513_v47, 0.0  ;;  %v2514_v50 = vmul.f32 %v2512_v46, %v2512_v46 }
 0xd9b   : > { %2516 = vadd.xlane.f32.xlu0 %v2515_v49 }
 0xd9c   : > { %v2518_v51 = vsel %vm977_vm1, %v2514_v50, 0.0 }
 0xd9d   : > { %2519 = vadd.xlane.f32.xlu1 %v2518_v51 }
 0xe28   : > { %v2517_v55 = vpop.xlane.xlu0 %2516 }
 0xe29   : > { %v2521_v54 = vmul.f32 0.03125, %v2517_v55 }
 0xe2a   : > { %v2520_v57 = vpop.xlane.xlu1 %2519 }
 0xe2b   : > { %v2523_v56 = vadd.f32 1e-05, %v2521_v54  ;;  %v2522_v58 = vmul.f32 0.03125, %v2520_v57 }
 0xe2d   : > { %3183 = vrsqrt.f32 %v2523_v56  ;;  %v2524_v59 = vadd.f32 1e-05, %v2522_v58 }
 0xe2f   : > { %3185 = vrsqrt.f32 %v2524_v59 }
 0xe37   : > { %v3184_v60 = vpop.eup %3183 }
 0xe38   : > { %v2527_v2 = vmul.f32 %v3184_v60, %v2511_v41 }
 0xe39   : > { %v3186_v62 = vpop.eup %3185 }
 0xe3a   : > { %v2528_v0 = vmul.f32 %v3186_v62, %v2512_v46  ;;  %v2535_v3 = vmul.f32 %v2876_v61, %v2527_v2 }
 0xe3c   : > { %v2536_v4 = vmul.f32 %v2876_v61, %v2528_v0  ;;  %v2543_v5 = vadd.f32 %v2877_v1, %v2535_v3 }
 0xe3e   : > { %v2544_v45 = vadd.f32 %v2877_v1, %v2536_v4 }
 0xe40   : > { %v2545_v6 = vpack.c.bf16 %v2544_v45, %v2543_v5 }
 0xe42   : > { %3077 = vmatmul.mubr.msk.bf16.vlgmr.msra.gmra.mrb[0].mxu1 %vm977_vm1, %v2545_v6 }
 0xf15   : > { %v2606_v8 = vpop.f32.mrb[0].mxu1 }
 0xf16   : > { %v2607_v9 = vadd.f32 %v2878_v7, %v2606_v8  ;;  %v3078_v10 = vpop.f32.mrb[1].mxu1 }
 0xf17   : > { %v2609_v11 = vpop.f32.mrb[2].mxu1 }
 0xf18   : > { %2613 = vst [vmem:[%s3925_s2] sm:$0xff] %v2607_v9  ;;  %v2610_v12 = vadd.f32 %v2878_v7, %v2609_v11  ;;  %v3079_v13 = vpop.f32.mrb[3].mxu1 }
 0xf1a   : > { %2614 = vst [vmem:[%s3925_s2 + $0x8] sm:$0xff] %v2610_v12 }
 0xf1b PF: > { %p3084_p6 = scmp.eq.s32.totalorder %s3385_s3, 1  ;;  %s3242_s22 = smov [#allocation4]  }
 0xf1c   : > { %s2629_s27 = sshll.u32 %s3242_s22, 4  ;;  %s2630_s27 = int_to_ptr.vmem [resolvable:$true] %s2629_s27 }
 0xf1d   : > { %s3187_s4 = scalar_lea.vmem %s2630_s27, 256  ;;  %p3194_p10 = scmp.lt.s32.totalorder %s2630_s27, %s2630_s27 }
 0xf1e   : > { %p3188_p7 = scmp.ne.s32.totalorder %s2630_s27, %s3187_s4  ;;  %p3195_p11 = scmp.lt.s32.totalorder %s3187_s4, %s3187_s4 }
 0xf20   : > { %p3189_p8 = pnand %p3188_p7, %p3084_p6  ;;  %p3196_p12 = por %p3195_p11, %p3194_p10 }
 0xf22   : > { %p3190_p9 = pneg %p3189_p8 }
 0xf24   : > { %p3197_p13 = pnand %p3196_p12, %p3190_p9 }
 0xf26   : > { %3200 = shalt.err (!%p3197_p13)
}
 0xf27   : > { %s3926_s25 = sld [smem:[#allocation26_spill]] }
 0xf2d   : > { %s3201_s6 = scalar_lea.hbm %s3926_s25, 256 }
 0xf2e   : > { %p3202_p0 = scmp.ne.s32.totalorder %s3926_s25, %s3201_s6  ;;  %p3207_p3 = scmp.lt.u32.totalorder %s3201_s6, %s3926_s25 }
 0xf30   : > { %p3203_p1 = pnand %p3202_p0, %p3084_p6 }
 0xf32   : > { %p3204_p2 = pneg %p3203_p1 }
 0xf34   : > { %p3209_p4 = pnand %p3207_p3, %p3204_p2 }
 0xf36   : > { %3212 = shalt.err (!%p3209_p4)
}
 0xf37   : > { %s3243_s16 = smov 128  }
 0xf38   : > { %3081 = dma.vmem_to_hbm [thread:$0]  (%p3084_p6), %s2630_s27, 256, %s3926_s25, [#allocation5], %s3243_s16, %s3243_s16, %s3237_s5  }
 0xf39   : > { %3218 = dma.done.wait (%p3084_p6), [#allocation5], 256  }
 0xf3a   : > { %3220 = vsyncadd (%p3084_p6), [#allocation5], 4294967040 }
 0xf3b PF: > { %s3927_s17 = sld [smem:[#allocation7_spill]] }
 0xf41   : > { %s38_s27 = sadd.s32 1, %s3927_s17  }
 0xf42   : > { %p35_p5 = scmp.ge.s32.totalorder %s38_s27, 4  }
 0xf44   :  { %37 = sbr.rel (!%p35_p5) target bundleno = 22 (0x16), region = 204 }
 0xf4b   :  { %2659 = vsyncpa [#allocation5], 1 }
 0xf4c   :  { %2661 = vsyncpa [#allocation5 + $0x1], 1 }

</bundles_post_ra>
